<compile_context>
chip_gen: v6e
topology: v6e:2x2x1
jax: 0.10.0
libtpu: 0.0.40
codegen_flags: <defaults>
</compile_context>

<pallas_src>
import jax
import jax.numpy as jnp
from jax import lax
from jax.experimental import pallas as pl
from jax.experimental.pallas import tpu as pltpu

N_STATES = 3        # Pendulum-v0 observation dim
N_ACTIONS = 1       # Pendulum-v0 action dim
HIDDEN = 50
HIDDEN_PAD = 128    # hidden dim zero-padded to one full 128-lane vreg width
MAX_BATCH_TILE = 1024   # review: raise tile cap (1024-2048 both fit VMEM easily on v5e/v6e/v7x)

_HIGH = lax.Precision.HIGHEST


def _round_up(n, m):
    return (n + m - 1) // m * m


def _num_tensorcores():
    """TensorCores one Pallas device can shard a grid over (heuristic, perf-only)."""
    try:
        kind = jax.devices()[0].device_kind.lower()
    except Exception:
        return 1
    # v4 / v5p (megacore) and v7x expose 2 TensorCores per device; v5e / v6e have 1.
    return 2 if any(t in kind for t in ("v7", "v5p", "v4")) else 1


def _choose_batch_tile(B):
    nc = _num_tensorcores()
    if nc <= 1 or B <= 128:
        # Single-TC chips (v5e/v6e) or tiny batches: one grid step if it fits the cap
        # (no forced split -> no extra ~0.35us step overhead), else cap-sized tiles.
        return B if B <= MAX_BATCH_TILE else MAX_BATCH_TILE
    # Multi-TC chips: split into an EVEN number of >=128-row steps so
    # dimension_semantics=("parallel",) gives both TensorCores equal work.
    steps = max(nc, _round_up(pl.cdiv(B, MAX_BATCH_TILE), nc))
    return min(_round_up(pl.cdiv(B, steps), 128), MAX_BATCH_TILE)


def actor_kernel(x_ref, w1_ref, b1_ref, w2_ref, b2_ref, w3_ref, b3_ref, o_ref):
    # x_ref: (tile, N_STATES).  Weights are PyTorch (out, in), hidden padded 50 -> 128.
    # Everything downstream is computed transposed: (features, batch), batch on lanes.
    x = x_ref[...]

    # Layer 1: h1 = W1 @ x^T, contraction K = 3, expressed as an NT dot_general so no
    # transpose of x is materialized.  The MXU has total slack, and the result is born
    # in the lane-dense (HIDDEN_PAD, tile) orientation.
    h1 = lax.dot_general(w1_ref[...], x, (((1,), (1,)), ((), ())),
                         preferred_element_type=jnp.float32,
                         precision=_HIGH)                     # (HIDDEN_PAD, tile)
    h1 = jnp.maximum(h1 + b1_ref[...], 0.0)                   # bias col broadcast + ReLU (VPU)

    # Layer 2: plain NN matmul on the MXU (f32, HIGHEST for parity with the f32 module).
    h2 = jnp.dot(w2_ref[...], h1, preferred_element_type=jnp.float32,
                 precision=_HIGH)                             # (HIDDEN_PAD, tile)
    h2 = jnp.maximum(h2 + b2_ref[...], 0.0)

    # Layer 3: (1, HIDDEN_PAD) @ (HIDDEN_PAD, tile) -> (1, tile), already lane-dense,
    # so the final store is an unmasked full-lane vst (no (tile, 1) column layout).
    y = jnp.dot(w3_ref[...], h2, preferred_element_type=jnp.float32,
                precision=_HIGH)                              # (N_ACTIONS, tile)
    o_ref[...] = jnp.tanh(y + b3_ref[...]).astype(o_ref.dtype)   # Tanh on the EUP


def _pad_params(params):
    """Zero-pad the hidden dim 50 -> 128 (padded units stay exactly 0 through bias/ReLU)."""
    w1, b1, w2, b2, w3, b3 = params
    p = HIDDEN_PAD - HIDDEN
    w1p = jnp.pad(w1, ((0, p), (0, 0)))                       # (128, N_STATES)
    b1p = jnp.pad(b1, ((0, p),)).reshape(HIDDEN_PAD, 1)       # (128, 1)
    w2p = jnp.pad(w2, ((0, p), (0, p)))                       # (128, 128)
    b2p = jnp.pad(b2, ((0, p),)).reshape(HIDDEN_PAD, 1)       # (128, 1)
    w3p = jnp.pad(w3, ((0, 0), (0, p)))                       # (N_ACTIONS, 128)
    b3p = b3.reshape(N_ACTIONS, 1)                            # (N_ACTIONS, 1)
    return w1p, b1p, w2p, b2p, w3p, b3p


def actor_forward(x, params, *, batch_tile=None):
    """x: (B, N_STATES) float32 -> (B, N_ACTIONS) float32."""
    # The transposed (1, B) output + contiguous reshape below relies on N_ACTIONS == 1
    # (Pendulum); a wider action space would need a transpose here instead.
    assert N_ACTIONS == 1
    B = x.shape[0]
    w1p, b1p, w2p, b2p, w3p, b3p = _pad_params(params)

    if batch_tile is None:
        tile = _choose_batch_tile(B)
    else:
        tile = B if batch_tile >= B else _round_up(batch_tile, 128)
    grid = (pl.cdiv(B, tile),)

    def rep(a):  # tiny weight/bias blocks, resident across the whole grid
        return pl.BlockSpec(a.shape, lambda i: (0, 0))

    flops = 2 * B * HIDDEN_PAD * (N_STATES + HIDDEN_PAD + N_ACTIONS)
    bytes_accessed = 4 * (B * (N_STATES + N_ACTIONS)
                          + w1p.size + b1p.size + w2p.size + b2p.size + w3p.size + b3p.size)

    out = pl.pallas_call(
        actor_kernel,
        out_shape=jax.ShapeDtypeStruct((N_ACTIONS, B), jnp.float32),
        grid_spec=pltpu.PrefetchScalarGridSpec(
            num_scalar_prefetch=0,
            grid=grid,
            in_specs=[
                pl.BlockSpec((tile, N_STATES), lambda i: (i, 0)),   # x batch tile
                rep(w1p), rep(b1p), rep(w2p), rep(b2p), rep(w3p), rep(b3p),
            ],
            out_specs=pl.BlockSpec((N_ACTIONS, tile), lambda i: (0, i)),  # lane-dense row
        ),
        compiler_params=pltpu.CompilerParams(
            dimension_semantics=("parallel",),   # shards batch tiles across TCs on v7x/v4/v5p
        ),
        cost_estimate=pl.CostEstimate(
            flops=flops, transcendentals=B, bytes_accessed=bytes_accessed),
    )(x, w1p, b1p, w2p, b2p, w3p, b3p)

    # (1, B) -> (B, 1): contiguous reshape, no extra HBM roundtrip (replaces old pad/slice).
    return out.reshape(B, N_ACTIONS)


def init_params(key):
    """nn.Linear-style U(-1/sqrt(fan_in), 1/sqrt(fan_in)) init, PyTorch (out, in) layout."""
    def linear(k, fan_in, fan_out):
        kw, kb = jax.random.split(k)
        bound = 1.0 / jnp.sqrt(float(fan_in))
        w = jax.random.uniform(kw, (fan_out, fan_in), jnp.float32, -bound, bound)
        b = jax.random.uniform(kb, (fan_out,), jnp.float32, -bound, bound)
        return w, b

    k1, k2, k3 = jax.random.split(key, 3)
    w1, b1 = linear(k1, N_STATES, HIDDEN)
    w2, b2 = linear(k2, HIDDEN, HIDDEN)
    w3, b3 = linear(k3, HIDDEN, N_ACTIONS)
    return (w1, b1, w2, b2, w3, b3)


def actor_ref(x, params):
    """Pure-JAX reference, f32 matmuls in HIGHEST precision (mirrors the torch f32 module)."""
    w1, b1, w2, b2, w3, b3 = params
    h1 = jnp.maximum(jnp.dot(x, w1.T, precision=_HIGH) + b1, 0.0)
    h2 = jnp.maximum(jnp.dot(h1, w2.T, precision=_HIGH) + b2, 0.0)
    return jnp.tanh(jnp.dot(h2, w3.T, precision=_HIGH) + b3)


if __name__ == "__main__":
    key = jax.random.PRNGKey(0)
    kp, kx = jax.random.split(key)
    params = init_params(kp)

    fwd = jax.jit(actor_forward, static_argnames=("batch_tile",))

    # B=16: single-tile fast path.  B=13: batch not a multiple of 8 (masked tail lanes on
    # the lane-dense output).  B=300 with batch_tile=128: multi-step grid with a ragged
    # last block on both the input rows and the output lanes.
    for B, bt in ((16, None), (13, None), (300, 128)):
        x = jax.random.normal(jax.random.fold_in(kx, B), (B, N_STATES), jnp.float32)
        out = jax.block_until_ready(fwd(x, params, batch_tile=bt))
        ref = jax.block_until_ready(actor_ref(x, params))
        assert out.shape == (B, N_ACTIONS), out.shape
        assert jnp.allclose(out, ref, atol=1e-5, rtol=1e-5), f"mismatch vs reference (B={B})"

    print("KERNEL_OK")
</pallas_src>

<mosaic_0001>
module attributes {stable_mosaic.version = 11 : i64} {
  func.func @actor_kernel(%arg0: i32, %arg1: memref<16x3xf32, #tpu.memory_space<vmem>>, %arg2: memref<128x3xf32, #tpu.memory_space<vmem>>, %arg3: memref<128x1xf32, #tpu.memory_space<vmem>>, %arg4: memref<128x128xf32, #tpu.memory_space<vmem>>, %arg5: memref<128x1xf32, #tpu.memory_space<vmem>>, %arg6: memref<1x128xf32, #tpu.memory_space<vmem>>, %arg7: memref<1x1xf32, #tpu.memory_space<vmem>>, %arg8: memref<1x16xf32, #tpu.memory_space<vmem>>) attributes {dimension_semantics = [#tpu.dimension_semantics<parallel>], iteration_bounds = array<i64: 1>, scalar_prefetch = 0 : i64, scratch_operands = 0 : i64, tpu.core_type = #tpu.core_type<tc>, window_params = [{transform_indices = @transform_0, window_bounds = array<i64: 16, 3>}, {pipeline_mode = #tpu.pipeline_mode<synchronous>, transform_indices = @transform_1, window_bounds = array<i64: 128, 3>}, {pipeline_mode = #tpu.pipeline_mode<synchronous>, transform_indices = @transform_2, window_bounds = array<i64: 128, 1>}, {pipeline_mode = #tpu.pipeline_mode<synchronous>, transform_indices = @transform_3, window_bounds = array<i64: 128, 128>}, {pipeline_mode = #tpu.pipeline_mode<synchronous>, transform_indices = @transform_4, window_bounds = array<i64: 128, 1>}, {pipeline_mode = #tpu.pipeline_mode<synchronous>, transform_indices = @transform_5, window_bounds = array<i64: 1, 128>}, {pipeline_mode = #tpu.pipeline_mode<synchronous>, transform_indices = @transform_6, window_bounds = array<i64: 1, 1>}, {transform_indices = @transform_7, window_bounds = array<i64: 1, 16>}]} {
    %c0 = arith.constant 0 : index
    %c0_0 = arith.constant 0 : index
    %0 = vector.load %arg1[%c0, %c0_0] : memref<16x3xf32, #tpu.memory_space<vmem>>, vector<16x3xf32>
    %c0_1 = arith.constant 0 : index
    %c0_2 = arith.constant 0 : index
    %1 = vector.load %arg2[%c0_1, %c0_2] : memref<128x3xf32, #tpu.memory_space<vmem>>, vector<128x3xf32>
    %cst = arith.constant dense<0.000000e+00> : vector<128x16xf32>
    %2 = tpu.matmul %1, %0, %cst {dimension_numbers = #tpu.dot_dimension_numbers<[1], [1], [0], [0], [0, 0, 1, 0], [], []>, precision = #tpu.contract_precision<fp32>} : vector<128x3xf32>, vector<16x3xf32>, vector<128x16xf32> -> vector<128x16xf32>
    %c0_3 = arith.constant 0 : index
    %c0_4 = arith.constant 0 : index
    %3 = vector.load %arg3[%c0_3, %c0_4] : memref<128x1xf32, #tpu.memory_space<vmem>>, vector<128x1xf32>
    %4 = vector.broadcast %3 : vector<128x1xf32> to vector<128x16xf32>
    %5 = arith.addf %2, %4 : vector<128x16xf32>
    %cst_5 = arith.constant 0.000000e+00 : f32
    %6 = vector.broadcast %cst_5 : f32 to vector<128x16xf32>
    %7 = arith.maximumf %5, %6 : vector<128x16xf32>
    %c0_6 = arith.constant 0 : index
    %c0_7 = arith.constant 0 : index
    %8 = vector.load %arg4[%c0_6, %c0_7] : memref<128x128xf32, #tpu.memory_space<vmem>>, vector<128x128xf32>
    %cst_8 = arith.constant dense<0.000000e+00> : vector<128x16xf32>
    %9 = tpu.matmul %8, %7, %cst_8 {dimension_numbers = #tpu.dot_dimension_numbers<[1], [0], [0], [1], [0, 0, 1, 1], [], []>, precision = #tpu.contract_precision<fp32>} : vector<128x128xf32>, vector<128x16xf32>, vector<128x16xf32> -> vector<128x16xf32>
    %c0_9 = arith.constant 0 : index
    %c0_10 = arith.constant 0 : index
    %10 = vector.load %arg5[%c0_9, %c0_10] : memref<128x1xf32, #tpu.memory_space<vmem>>, vector<128x1xf32>
    %11 = vector.broadcast %10 : vector<128x1xf32> to vector<128x16xf32>
    %12 = arith.addf %9, %11 : vector<128x16xf32>
    %cst_11 = arith.constant 0.000000e+00 : f32
    %13 = vector.broadcast %cst_11 : f32 to vector<128x16xf32>
    %14 = arith.maximumf %12, %13 : vector<128x16xf32>
    %c0_12 = arith.constant 0 : index
    %c0_13 = arith.constant 0 : index
    %15 = vector.load %arg6[%c0_12, %c0_13] : memref<1x128xf32, #tpu.memory_space<vmem>>, vector<1x128xf32>
    %cst_14 = arith.constant dense<0.000000e+00> : vector<1x16xf32>
    %16 = tpu.matmul %15, %14, %cst_14 {dimension_numbers = #tpu.dot_dimension_numbers<[1], [0], [0], [1], [0, 0, 1, 1], [], []>, precision = #tpu.contract_precision<fp32>} : vector<1x128xf32>, vector<128x16xf32>, vector<1x16xf32> -> vector<1x16xf32>
    %c0_15 = arith.constant 0 : index
    %c0_16 = arith.constant 0 : index
    %17 = vector.load %arg7[%c0_15, %c0_16] : memref<1x1xf32, #tpu.memory_space<vmem>>, vector<1x1xf32>
    %18 = vector.broadcast %17 : vector<1x1xf32> to vector<1x16xf32>
    %19 = arith.addf %16, %18 : vector<1x16xf32>
    %20 = math.tanh %19 : vector<1x16xf32>
    %c0_17 = arith.constant 0 : index
    %c0_18 = arith.constant 0 : index
    %21 = vector.load %arg8[%c0_17, %c0_18] : memref<1x16xf32, #tpu.memory_space<vmem>>, vector<1x16xf32>
    tpu.vector_store %arg8[%c0_17, %c0_18], %20 {strides = array<i32>} : memref<1x16xf32, #tpu.memory_space<vmem>>, vector<1x16xf32>,
    return
  }
  func.func @transform_0(%arg0: i32) -> (i32, i32) {
    %c0_i32 = arith.constant 0 : i32
    %c0_i32_0 = arith.constant 0 : i32
    return %arg0, %c0_i32 : i32, i32
  }
  func.func @transform_1(%arg0: i32) -> (i32, i32) {
    %c0_i32 = arith.constant 0 : i32
    %c0_i32_0 = arith.constant 0 : i32
    %c0_i32_1 = arith.constant 0 : i32
    return %c0_i32, %c0_i32_0 : i32, i32
  }
  func.func @transform_2(%arg0: i32) -> (i32, i32) {
    %c0_i32 = arith.constant 0 : i32
    %c0_i32_0 = arith.constant 0 : i32
    %c0_i32_1 = arith.constant 0 : i32
    return %c0_i32, %c0_i32_0 : i32, i32
  }
  func.func @transform_3(%arg0: i32) -> (i32, i32) {
    %c0_i32 = arith.constant 0 : i32
    %c0_i32_0 = arith.constant 0 : i32
    %c0_i32_1 = arith.constant 0 : i32
    return %c0_i32, %c0_i32_0 : i32, i32
  }
  func.func @transform_4(%arg0: i32) -> (i32, i32) {
    %c0_i32 = arith.constant 0 : i32
    %c0_i32_0 = arith.constant 0 : i32
    %c0_i32_1 = arith.constant 0 : i32
    return %c0_i32, %c0_i32_0 : i32, i32
  }
  func.func @transform_5(%arg0: i32) -> (i32, i32) {
    %c0_i32 = arith.constant 0 : i32
    %c0_i32_0 = arith.constant 0 : i32
    %c0_i32_1 = arith.constant 0 : i32
    return %c0_i32, %c0_i32_0 : i32, i32
  }
  func.func @transform_6(%arg0: i32) -> (i32, i32) {
    %c0_i32 = arith.constant 0 : i32
    %c0_i32_0 = arith.constant 0 : i32
    %c0_i32_1 = arith.constant 0 : i32
    return %c0_i32, %c0_i32_0 : i32, i32
  }
  func.func @transform_7(%arg0: i32) -> (i32, i32) {
    %c0_i32 = arith.constant 0 : i32
    %c0_i32_0 = arith.constant 0 : i32
    return %c0_i32, %arg0 : i32, i32
  }
}

</mosaic_0001>

<bundles_post_ra>
// kernel: actor_forward.1
= control target key start
LH: loop header
LB: loop body
LE: loop exit
PB: predicated region body
PF: predicated region fallthrough
CT: control target
= control target key end

     0   :  { %s6328_s0 = inlined_call_operand.vmem [shape: f32[16,3], index: 0, kind: input, shape index: {}]   ;;  %s6329_s1 = inlined_call_operand.vmem [shape: f32[128,3], index: 1, kind: input, shape index: {}]   ;;  %s6330_s2 = inlined_call_operand.vmem [shape: f32[128,1], index: 2, kind: input, shape index: {}]   ;;  %s6331_s3 = inlined_call_operand.vmem [shape: f32[128,128], index: 3, kind: input, shape index: {}]   ;;  %s6332_s4 = inlined_call_operand.vmem [shape: f32[128,1], index: 4, kind: input, shape index: {}]   ;;  %s6333_s5 = inlined_call_operand.vmem [shape: f32[1,128], index: 5, kind: input, shape index: {}]   ;;  %s6334_s6 = inlined_call_operand.<no memory space> [shape: f32[1,1], index: 6, kind: input, shape index: {}]   ;;  %s6335_s7 = inlined_call_operand.hbm [shape: f32[1,16], index: 7, kind: output, shape index: {}]  }
   0x1   :  { %v12_v0 = vstv %s6334_s6 }
   0x2   :  { %13 = vst [vmem:[#allocation2] sm:$0x1] %v12_v0 }
   0x3   :  { %v30_v1 = vld [vmem:[%s6328_s0 + $0x8] sm:$0xff]  ;;  %vm143_vm0 = vcmask 23552   ;;  %v29_v2 = vld [vmem:[%s6328_s0] sm:$0xff]  ;;  %v33_v8 = vld [vmem:[%s6329_s1 + $0x10] sm:$0xff]  ;;  %v4547_v10 = vmov 0  }
   0x4   :  { %v31_v3 = vld [vmem:[%s6329_s1] sm:$0xff]  ;;  %v196_v4 = vsel %vm143_vm0, %v30_v1, 0  ;;  %v193_v5 = vsel %vm143_vm0, %v29_v2, 0  ;;  %v32_v7 = vld [vmem:[%s6329_s1 + $0x8] sm:$0xff]  ;;  %v34_v9 = vld [vmem:[%s6329_s1 + $0x18] sm:$0xff]  ;;  %4522 = vset.pattern.permute.xlu1 %v4547_v10  ;;  %4521 = vset.pattern.permute.xlu0 %v4547_v10  ;;  %v151_v18 = vsel %vm143_vm0, %v33_v8, 0 }
   0x5   :  { %v145_v6 = vsel %vm143_vm0, %v31_v3, 0  ;;  %v4615_v11 = vand.u32 4294901760, %v196_v4  ;;  %v4617_v12 = vand.u32 4294901760, %v193_v5  ;;  %v148_v14 = vsel %vm143_vm0, %v32_v7, 0  ;;  %v35_v15 = vld [vmem:[%s6329_s1 + $0x20] sm:$0xff]  ;;  %v36_v16 = vld [vmem:[%s6329_s1 + $0x28] sm:$0xff] }
   0x6   :  { %v4619_v13 = vand.u32 4294901760, %v145_v6  ;;  %v4628_v17 = vand.u32 4294901760, %v148_v14  ;;  %v154_v19 = vsel %vm143_vm0, %v34_v9, 0  ;;  %v157_v20 = vsel %vm143_vm0, %v35_v15, 0  ;;  %v62_v33 = vld [vmem:[%s6330_s2 + $0x78] sm:$0xff]  ;;  %v60_v38 = vld [vmem:[%s6330_s2 + $0x68] sm:$0xff] }
   0x7   :  { %3803 = vmatprep.subr.mxu0 %v4615_v11  ;;  %v4638_v22 = vsub.f32 %v196_v4, %v4615_v11  ;;  %v4640_v23 = vand.u32 4294901760, %v151_v18  ;;  %v4643_v24 = vsub.f32 %v193_v5, %v4617_v12  ;;  %v4650_v26 = vand.u32 4294901760, %v154_v19  ;;  %140 = vperm.xlu0 %4521, %v62_v33   ;;  %v61_v43 = vld [vmem:[%s6330_s2 + $0x70] sm:$0xff]  ;;  %v38_v49 = vld [vmem:[%s6329_s1 + $0x38] sm:$0xff]  ;;  %v39_v50 = vld [vmem:[%s6329_s1 + $0x40] sm:$0xff] }
   0x8   :  { %v4635_v21 = vsub.f32 %v145_v6, %v4619_v13  ;;  %3835 = vmatprep.mubr.f32.mxu1 %v4619_v13  ;;  %3804 = vmatpush3.xpose.msra.mxu0 %v4615_v11  ;;  %v4648_v25 = vsub.f32 %v148_v14, %v4628_v17  ;;  %v4652_v27 = vand.u32 4294901760, %v157_v20  ;;  %v160_v28 = vsel %vm143_vm0, %v36_v16, 0  ;;  %v37_v48 = vld [vmem:[%s6329_s1 + $0x30] sm:$0xff]  ;;  %v40_v59 = vld [vmem:[%s6329_s1 + $0x48] sm:$0xff]  ;;  %v59_v1 = vld [vmem:[%s6330_s2 + $0x60] sm:$0xff] }
   0x9   :  { %3805 = vmatprep.subr.mxu0 %v4617_v12  ;;  %v4658_v30 = vand.u32 4294901760, %v4638_v22  ;;  %v4661_v31 = vsub.f32 %v151_v18, %v4640_v23  ;;  %v4664_v32 = vand.u32 4294901760, %v4643_v24  ;;  %v4671_v35 = vsub.f32 %v154_v19, %v4650_v26  ;;  %130 = vperm.xlu1 %4522, %v60_v38   ;;  %v41_v60 = vld [vmem:[%s6329_s1 + $0x50] sm:$0xff]  ;;  %v42_v6 = vld [vmem:[%s6329_s1 + $0x58] sm:$0xff]  ;;  %v43_v7 = vld [vmem:[%s6329_s1 + $0x60] sm:$0xff] }
   0xa   :  { %v267_v29 = vand.u32 4294901760, %v4635_v21  ;;  %v277_v34 = vand.u32 4294901760, %v4648_v25  ;;  %v4674_v36 = vsub.f32 %v157_v20, %v4652_v27  ;;  %v4676_v37 = vand.u32 4294901760, %v160_v28  ;;  %v58_v8 = vld [vmem:[%s6330_s2 + $0x58] sm:$0xff] }
   0xb   :  { %v457_v40 = vsub.f32 %v4638_v22, %v4658_v30  ;;  %v287_v41 = vand.u32 4294901760, %v4661_v31  ;;  %v464_v42 = vsub.f32 %v4643_v24, %v4664_v32  ;;  %v297_v45 = vand.u32 4294901760, %v4671_v35  ;;  %135 = vperm.xlu0 %4521, %v61_v43  }
   0xc   :  { %v268_v39 = vsub.f32 %v4635_v21, %v267_v29  ;;  %3806 = vmatpush3.xpose.msra.mxu0 %v4617_v12  ;;  %v278_v44 = vsub.f32 %v4648_v25, %v277_v34  ;;  %v307_v46 = vand.u32 4294901760, %v4674_v36  ;;  %v4699_v47 = vsub.f32 %v160_v28, %v4676_v37  ;;  %v44_v28 = vld [vmem:[%s6329_s1 + $0x68] sm:$0xff] }
   0xd   :  { %v458_v52 = vand.u32 4294901760, %v457_v40  ;;  %v288_v53 = vsub.f32 %v4661_v31, %v287_v41  ;;  %v465_v54 = vand.u32 4294901760, %v464_v42  ;;  %3859 = vmatprep.subr.mxu0 %v4638_v22  ;;  %v298_v56 = vsub.f32 %v4671_v35, %v297_v45  ;;  %125 = vperm.xlu1 %4522, %v59_v1   ;;  %v57_v40 = vld [vmem:[%s6330_s2 + $0x50] sm:$0xff] }
   0xe   :  { %v269_v51 = vand.u32 4294901760, %v268_v39  ;;  %v279_v55 = vand.u32 4294901760, %v278_v44  ;;  %v308_v57 = vsub.f32 %v4674_v36, %v307_v46  ;;  %v317_v58 = vand.u32 4294901760, %v4699_v47 }
   0xf   :  { %3831 = vmatprep.subr.mxu1 %v458_v52  ;;  %v289_v61 = vand.u32 4294901760, %v288_v53  ;;  %v163_v62 = vsel %vm143_vm0, %v37_v48, 0  ;;  %v166_v63 = vsel %vm143_vm0, %v38_v49, 0  ;;  %v169_v0 = vsel %vm143_vm0, %v39_v50, 0  ;;  %120 = vperm.xlu0 %4521, %v58_v8  }
  0x10   :  { %3807 = vmatprep.mubr.f32.mxu0 %v269_v51  ;;  %3832 = vmatpush3.xpose.msra.mxu1 %v458_v52  ;;  %v299_v2 = vand.u32 4294901760, %v298_v56  ;;  %v309_v3 = vand.u32 4294901760, %v308_v57  ;;  %v318_v4 = vsub.f32 %v4699_v47, %v317_v58  ;;  %v4736_v5 = vand.u32 4294901760, %v163_v62 }
  0x11   :  { %3808 = vmatmul.mubr.f32.vlgmr.msra.gmra.mxu0 %v279_v55  ;;  %3833 = vmatprep.subr.mxu1 %v465_v54  ;;  %v4747_v9 = vand.u32 4294901760, %v166_v63  ;;  %v4749_v10 = vand.u32 4294901760, %v169_v0  ;;  %v172_v14 = vsel %vm143_vm0, %v40_v59, 0  ;;  %v175_v15 = vsel %vm143_vm0, %v41_v60, 0 }
  0x12   :  { %3810 = vmatprep.mubr.f32.mxu0 %v289_v61  ;;  %3860 = vmatpush3.xpose.msra.mxu0 %v4638_v22  ;;  %v319_v16 = vand.u32 4294901760, %v318_v4  ;;  %v4755_v18 = vsub.f32 %v163_v62, %v4736_v5  ;;  %v4757_v19 = vand.u32 4294901760, %v172_v14  ;;  %v4759_v20 = vand.u32 4294901760, %v175_v15 }
  0x13   :  { %v4765_v33 = vsub.f32 %v166_v63, %v4747_v9  ;;  %v4768_v38 = vsub.f32 %v169_v0, %v4749_v10  ;;  %v178_v22 = vsel %vm143_vm0, %v42_v6, 0  ;;  %3861 = vmatprep.subr.mxu0 %v4643_v24  ;;  %v181_v39 = vsel %vm143_vm0, %v43_v7, 0  ;;  %115 = vperm.xlu1 %4522, %v57_v40  }
  0x14   :  { %3834 = vmatpush3.xpose.msra.mxu1 %v465_v54  ;;  %v327_v42 = vand.u32 4294901760, %v4755_v18  ;;  %v4778_v43 = vsub.f32 %v172_v14, %v4757_v19  ;;  %v4781_v44 = vsub.f32 %v175_v15, %v4759_v20  ;;  %v4783_v48 = vand.u32 4294901760, %v178_v22 }
  0x15   :  { %3811 = vmatmul.mubr.f32.gmra.mxu0 %v299_v2  ;;  %3887 = vmatprep.subr.mxu1 %v4615_v11  ;;  %v337_v49 = vand.u32 4294901760, %v4765_v33  ;;  %v347_v50 = vand.u32 4294901760, %v4768_v38  ;;  %v4788_v51 = vand.u32 4294901760, %v181_v39  ;;  %v184_v52 = vsel %vm143_vm0, %v44_v28, 0 }
  0x16   :  { %3813 = vmatprep.mubr.f32.mxu0 %v309_v3  ;;  %v328_v53 = vsub.f32 %v4755_v18, %v327_v42  ;;  %v357_v54 = vand.u32 4294901760, %v4778_v43  ;;  %v367_v55 = vand.u32 4294901760, %v4781_v44  ;;  %v4797_v56 = vsub.f32 %v178_v22, %v4783_v48  ;;  %3862 = vmatpush3.xpose.msra.mxu0 %v4643_v24 }
  0x17   :  { %14 = vsyncpa [#allocation4], 0  ;;  %3836 = vmatmul.mubr.f32.vlgmr.msra.gmra.mxu1 %v4628_v17  ;;  %v338_v57 = vsub.f32 %v4765_v33, %v337_v49  ;;  %v348_v59 = vsub.f32 %v4768_v38, %v347_v50  ;;  %v4808_v60 = vsub.f32 %v181_v39, %v4788_v51  ;;  %v4810_v61 = vand.u32 4294901760, %v184_v52  ;;  %v45_v24 = vld [vmem:[%s6329_s1 + $0x70] sm:$0xff]  ;;  %3915 = vmatprep.subr.mxu0 %v4658_v30  ;;  %v56_v62 = vld [vmem:[%s6330_s2 + $0x48] sm:$0xff] }
  0x18   :  { %3888 = vmatpush3.xpose.msra.mxu1 %v4615_v11  ;;  %v329_v63 = vand.u32 4294901760, %v328_v53  ;;  %v358_v0 = vsub.f32 %v4778_v43, %v357_v54  ;;  %v368_v1 = vsub.f32 %v4781_v44, %v367_v55  ;;  %v377_v2 = vand.u32 4294901760, %v4797_v56  ;;  %v46_v3 = vld [vmem:[%s6329_s1 + $0x78] sm:$0xff]  ;;  %v55_v4 = vld [vmem:[%s6330_s2 + $0x40] sm:$0xff]  ;;  %3838 = vmatprep.mubr.f32.mxu1 %v4640_v23 }
  0x19   :  { %3814 = vmatmul.mubr.f32.gmra.mxu0 %v319_v16  ;;  %v339_v6 = vand.u32 4294901760, %v338_v57  ;;  %v349_v7 = vand.u32 4294901760, %v348_v59  ;;  %v387_v8 = vand.u32 4294901760, %v4808_v60  ;;  %3889 = vmatprep.subr.mxu1 %v4617_v12  ;;  %v4837_v14 = vsub.f32 %v184_v52, %v4810_v61  ;;  %v54_v22 = vld [vmem:[%s6330_s2 + $0x38] sm:$0xff]  ;;  %v53_v57 = vld [vmem:[%s6330_s2 + $0x30] sm:$0xff] }
  0x1a   :  { %3816 = vmatprep.mubr.f32.mxu0 %v329_v63  ;;  %v187_v15 = vsel %vm143_vm0, %v45_v24, 0  ;;  %110 = vperm.xlu0 %4521, %v56_v62   ;;  %v190_v28 = vsel %vm143_vm0, %v46_v3, 0  ;;  %v359_v39 = vand.u32 4294901760, %v358_v0  ;;  %v378_v40 = vsub.f32 %v4797_v56, %v377_v2 }
  0x1b   :  { %3839 = vmatmul.mubr.f32.gmra.mxu1 %v4650_v26  ;;  %v4841_v16 = vand.u32 4294901760, %v187_v15  ;;  %105 = vperm.xlu1 %4522, %v55_v4   ;;  %v397_v52 = vand.u32 4294901760, %v4837_v14  ;;  %v4852_v53 = vand.u32 4294901760, %v190_v28  ;;  %v369_v59 = vand.u32 4294901760, %v368_v1  ;;  %v52_v1 = vld [vmem:[%s6330_s2 + $0x28] sm:$0xff] }
  0x1c   :  { %3841 = vmatprep.mubr.f32.mxu1 %v4652_v27  ;;  %v388_v24 = vsub.f32 %v4808_v60, %v387_v8  ;;  %3890 = vmatpush3.xpose.msra.mxu1 %v4617_v12  ;;  %v379_v3 = vand.u32 4294901760, %v378_v40  ;;  %vm4549_vm1 = vmmov 0   ;;  %vm3385_vm2 = vcmask 122880  }
  0x1d   :  { %3817 = vmatmul.mubr.f32.gmra.mxu0 %v339_v6  ;;  %v4862_v62 = vsub.f32 %v187_v15, %v4841_v16  ;;  %v4865_v63 = vsub.f32 %v190_v28, %v4852_v53  ;;  %3943 = vmatprep.subr.mxu1 %v4615_v11  ;;  %v398_v4 = vsub.f32 %v4837_v14, %v397_v52 }
  0x1e   :  { %3819 = vmatprep.mubr.f32.mxu0 %v349_v7  ;;  %100 = vperm.xlu0 %4521, %v54_v22   ;;  %v51_v7 = vld [vmem:[%s6330_s2 + $0x20] sm:$0xff]  ;;  %v389_v15 = vand.u32 4294901760, %v388_v24  ;;  %v50_v22 = vld [vmem:[%s6330_s2 + $0x18] sm:$0xff]  ;;  %v48_v24 = vld [vmem:[%s6330_s2 + $0x8] sm:$0xff] }
  0x1f   :  { %3842 = vmatmul.mubr.f32.gmra.mxu1 %v4676_v37  ;;  %v407_v0 = vand.u32 4294901760, %v4862_v62  ;;  %95 = vperm.xlu1 %4522, %v53_v57   ;;  %v417_v6 = vand.u32 4294901760, %v4865_v63  ;;  %v49_v57 = vld [vmem:[%s6330_s2 + $0x10] sm:$0xff] }
  0x20   :  { %3844 = vmatprep.mubr.f32.mxu1 %v4736_v5 }
  0x21   :  { %3820 = vmatmul.mubr.f32.gmra.mxu0 %v359_v39  ;;  %v408_v28 = vsub.f32 %v4862_v62, %v407_v0  ;;  %v399_v39 = vand.u32 4294901760, %v398_v4  ;;  %v418_v40 = vsub.f32 %v4865_v63, %v417_v6  ;;  %v1349_v4 = vld [vmem:[%s6332_s4 + $0x78] sm:$0xff] }
  0x22   :  { %3822 = vmatprep.mubr.f32.mxu0 %v369_v59  ;;  %90 = vperm.xlu0 %4521, %v52_v1  }
  0x23   :  { %3845 = vmatmul.mubr.f32.gmra.mxu1 %v4747_v9  ;;  %85 = vperm.xlu1 %4522, %v51_v7   ;;  %v409_v59 = vand.u32 4294901760, %v408_v28  ;;  %v419_v1 = vand.u32 4294901760, %v418_v40  ;;  %v1348_v7 = vld [vmem:[%s6332_s4 + $0x70] sm:$0xff]  ;;  %v1346_v28 = vld [vmem:[%s6332_s4 + $0x60] sm:$0xff] }
  0x24   :  { %3847 = vmatprep.mubr.f32.mxu1 %v4749_v10 }
  0x25   :  { %3823 = vmatmul.mubr.f32.gmra.mxu0 %v379_v3  ;;  %v47_v3 = vld [vmem:[%s6330_s2] sm:$0xff] }
  0x26   :  { %3825 = vmatprep.mubr.f32.mxu0 %v389_v15  ;;  %80 = vperm.xlu0 %4521, %v50_v22   ;;  %v1347_v15 = vld [vmem:[%s6332_s4 + $0x68] sm:$0xff]  ;;  %v1345_v22 = vld [vmem:[%s6332_s4 + $0x58] sm:$0xff] }
  0x27   :  { %3848 = vmatmul.mubr.f32.gmra.mxu1 %v4757_v19  ;;  %75 = vperm.xlu1 %4522, %v49_v57  }
  0x28   :  { %3850 = vmatprep.mubr.f32.mxu1 %v4759_v20 }
  0x29   :  { %3826 = vmatmul.mubr.f32.gmra.mxu0 %v399_v39  ;;  %v1344_v39 = vld [vmem:[%s6332_s4 + $0x50] sm:$0xff] }
  0x2a   :  { %3828 = vmatprep.mubr.f32.mxu0 %v409_v59  ;;  %70 = vperm.xlu0 %4521, %v48_v24  }
  0x2b   :  { %3851 = vmatmul.mubr.f32.gmra.mxu1 %v4783_v48  ;;  %65 = vperm.xlu1 %4522, %v47_v3  }
  0x2c   :  { %3853 = vmatprep.mubr.f32.mxu1 %v4788_v51 }
  0x2d   :  { %3829 = vmatmul.mubr.f32.gmra.mxu0 %v419_v1 }
  0x2e   :  { %3863 = vmatprep.mubr.f32.mxu0 %v4635_v21  ;;  %1427 = vperm.xlu0 %4521, %v1349_v4   ;;  %v1342_v21 = vld [vmem:[%s6332_s4 + $0x40] sm:$0xff] }
  0x2f   :  { %3854 = vmatmul.mubr.f32.gmra.mxu1 %v4810_v61  ;;  %1422 = vperm.xlu1 %4522, %v1348_v7  }
  0x30   :  { %3856 = vmatprep.mubr.f32.mxu1 %v4841_v16 }
  0x31   :  { %3864 = vmatmul.mubr.f32.vlgmr.msra.gmra.mxu0 %v4648_v25  ;;  %v1341_v25 = vld [vmem:[%s6332_s4 + $0x38] sm:$0xff] }
  0x32   :  { %3866 = vmatprep.mubr.f32.mxu0 %v4661_v31  ;;  %3916 = vmatpush3.xpose.msra.mxu0 %v4658_v30  ;;  %v1343_v30 = vld [vmem:[%s6332_s4 + $0x48] sm:$0xff]  ;;  %v1338_v31 = vld [vmem:[%s6332_s4 + $0x20] sm:$0xff] }
  0x33   :  { %3917 = vmatprep.subr.mxu0 %v4664_v32  ;;  %1417 = vperm.xlu0 %4521, %v1347_v15  }
  0x34   :  { %3857 = vmatmul.mubr.f32.gmra.mxu1 %v4852_v53  ;;  %1412 = vperm.xlu1 %4522, %v1346_v28  }
  0x35   :  { %3867 = vmatmul.mubr.f32.gmra.mxu0 %v4671_v35  ;;  %3891 = vmatprep.mubr.f32.mxu1 %v267_v29  ;;  %v1339_v29 = vld [vmem:[%s6332_s4 + $0x28] sm:$0xff]  ;;  %v1334_v35 = vld [vmem:[%s6332_s4] sm:$0xff] }
  0x36   :  { %3869 = vmatprep.mubr.f32.mxu0 %v4674_v36  ;;  %3918 = vmatpush3.xpose.msra.mxu0 %v4664_v32  ;;  %v1336_v32 = vld [vmem:[%s6332_s4 + $0x10] sm:$0xff]  ;;  %v2733_v36 = vld [vmem:[#allocation2] sm:$0x1] }
  0x37   :  { %1407 = vperm.xlu0 %4521, %v1345_v22  }
  0x38   :  { %3892 = vmatmul.mubr.f32.vlgmr.msra.gmra.mxu1 %v277_v34  ;;  %1402 = vperm.xlu1 %4522, %v1344_v39   ;;  %v1335_v34 = vld [vmem:[%s6332_s4 + $0x8] sm:$0xff] }
  0x39   :  { %3870 = vmatmul.mubr.f32.gmra.mxu0 %v4699_v47  ;;  %3944 = vmatpush3.xpose.msra.mxu1 %v4615_v11  ;;  %v1340_v11 = vld [vmem:[%s6332_s4 + $0x30] sm:$0xff] }
  0x3a   :  { %3894 = vmatprep.mubr.f32.mxu1 %v287_v41  ;;  %3872 = vmatprep.mubr.f32.mxu0 %v4755_v18  ;;  %v1318_v18 = vld [vmem:[%s6331_s3] sm:$0xff] }
  0x3b   :  { %3945 = vmatprep.subr.mxu1 %v4617_v12  ;;  %1397 = vperm.xlu0 %4521, %v1343_v30  }
  0x3c   :  { %3895 = vmatmul.mubr.f32.gmra.mxu1 %v297_v45  ;;  %1392 = vperm.xlu1 %4522, %v1342_v21  }
  0x3d   :  { %3873 = vmatmul.mubr.f32.gmra.mxu0 %v4765_v33  ;;  %3897 = vmatprep.mubr.f32.mxu1 %v307_v46 }
  0x3e   :  { %3875 = vmatprep.mubr.f32.mxu0 %v4768_v38  ;;  %3946 = vmatpush3.xpose.msra.mxu1 %v4617_v12  ;;  %v1337_v12 = vld [vmem:[%s6332_s4 + $0x18] sm:$0xff] }
  0x3f   :  { %1387 = vperm.xlu0 %4521, %v1341_v25  }
  0x40   :  { %3898 = vmatmul.mubr.f32.gmra.mxu1 %v317_v58  ;;  %1382 = vperm.xlu1 %4522, %v1340_v11  }
  0x41   :  { %3876 = vmatmul.mubr.f32.gmra.mxu0 %v4778_v43  ;;  %3900 = vmatprep.mubr.f32.mxu1 %v327_v42 }
  0x42   :  { %3878 = vmatprep.mubr.f32.mxu0 %v4781_v44 }
  0x43   :  { %1377 = vperm.xlu0 %4521, %v1339_v29  }
  0x44   :  { %3901 = vmatmul.mubr.f32.gmra.mxu1 %v337_v49  ;;  %1372 = vperm.xlu1 %4522, %v1338_v31  }
  0x45   :  { %3879 = vmatmul.mubr.f32.gmra.mxu0 %v4797_v56  ;;  %3903 = vmatprep.mubr.f32.mxu1 %v347_v50 }
  0x46   :  { %3881 = vmatprep.mubr.f32.mxu0 %v4808_v60 }
  0x47   :  { %1367 = vperm.xlu0 %4521, %v1337_v12  }
  0x48   :  { %3904 = vmatmul.mubr.f32.gmra.mxu1 %v357_v54  ;;  %1362 = vperm.xlu1 %4522, %v1336_v32  }
  0x49   :  { %3882 = vmatmul.mubr.f32.gmra.mxu0 %v4837_v14  ;;  %3906 = vmatprep.mubr.f32.mxu1 %v367_v55 }
  0x4a   :  { %3884 = vmatprep.mubr.f32.mxu0 %v4862_v62 }
  0x4b   :  { %1357 = vperm.xlu0 %4521, %v1335_v34  }
  0x4c   :  { %3907 = vmatmul.mubr.f32.gmra.mxu1 %v377_v2  ;;  %1352 = vperm.xlu1 %4522, %v1334_v35  }
  0x4d   :  { %3885 = vmatmul.mubr.f32.gmra.mxu0 %v4865_v63  ;;  %3909 = vmatprep.mubr.f32.mxu1 %v387_v8 }
  0x4e   :  { %3919 = vmatprep.mubr.f32.mxu0 %v4619_v13 }
  0x4f   :  { %2736 = vperm.xlu0 %4521, %v2733_v36  }
  0x50   :  { %3910 = vmatmul.mubr.f32.gmra.mxu1 %v397_v52 }
  0x51   :  { %3920 = vmatmul.mubr.f32.vlgmr.msra.gmra.mxu0 %v4628_v17  ;;  %3912 = vmatprep.mubr.f32.mxu1 %v407_v0 }
  0x52   :  { %3922 = vmatprep.mubr.f32.mxu0 %v4640_v23 }
  0x54   :  { %3913 = vmatmul.mubr.f32.gmra.mxu1 %v417_v6 }
  0x55   :  { %3923 = vmatmul.mubr.f32.gmra.mxu0 %v4650_v26  ;;  %3947 = vmatprep.mubr.f32.mxu1 %v4619_v13 }
  0x56   :  { %3925 = vmatprep.mubr.f32.mxu0 %v4652_v27 }
  0x58   :  { %3948 = vmatmul.mubr.f32.vlgmr.msra.gmra.mxu1 %v4628_v17 }
  0x59   :  { %3926 = vmatmul.mubr.f32.gmra.mxu0 %v4676_v37  ;;  %3950 = vmatprep.mubr.f32.mxu1 %v4640_v23 }
  0x5a   :  { %3928 = vmatprep.mubr.f32.mxu0 %v4736_v5 }
  0x5c   :  { %3951 = vmatmul.mubr.f32.gmra.mxu1 %v4650_v26 }
  0x5d   :  { %3929 = vmatmul.mubr.f32.gmra.mxu0 %v4747_v9  ;;  %3953 = vmatprep.mubr.f32.mxu1 %v4652_v27 }
  0x5e   :  { %3931 = vmatprep.mubr.f32.mxu0 %v4749_v10 }
  0x60   :  { %3954 = vmatmul.mubr.f32.gmra.mxu1 %v4676_v37 }
  0x61   :  { %3932 = vmatmul.mubr.f32.gmra.mxu0 %v4757_v19  ;;  %3956 = vmatprep.mubr.f32.mxu1 %v4736_v5 }
  0x62   :  { %3934 = vmatprep.mubr.f32.mxu0 %v4759_v20 }
  0x64   :  { %3957 = vmatmul.mubr.f32.gmra.mxu1 %v4747_v9 }
  0x65   :  { %3935 = vmatmul.mubr.f32.gmra.mxu0 %v4783_v48  ;;  %3959 = vmatprep.mubr.f32.mxu1 %v4749_v10 }
  0x66   :  { %3937 = vmatprep.mubr.f32.mxu0 %v4788_v51 }
  0x68   :  { %3960 = vmatmul.mubr.f32.gmra.mxu1 %v4757_v19 }
  0x69   :  { %3938 = vmatmul.mubr.f32.gmra.mxu0 %v4810_v61  ;;  %3962 = vmatprep.mubr.f32.mxu1 %v4759_v20  ;;  %v5055_v20 = vand.u32 4294901760, %v1318_v18 }
  0x6a   :  { %3940 = vmatprep.mubr.f32.mxu0 %v4841_v16 }
  0x6b   :  { %6378 = vst [vmem:[#allocation6_spill] sm:$0xff] %v5055_v20  ;;  %v5058_v42 = vsub.f32 %v1318_v18, %v5055_v20 }
  0x6c   :  { %3963 = vmatmul.mubr.f32.gmra.mxu1 %v4783_v48 }
  0x6d   :  { %3941 = vmatmul.mubr.f32.gmra.mxu0 %v4852_v53  ;;  %3965 = vmatprep.mubr.f32.mxu1 %v4788_v51  ;;  %6379 = vst [vmem:[#allocation7_spill] sm:$0xff] %v5058_v42  ;;  %v6336_v48 = vand.u32 4294901760, %v5058_v42 }
  0x6f   :  { %v1514_v51 = vsub.f32 %v5058_v42, %v6336_v48 }
  0x70   :  { %3966 = vmatmul.mubr.f32.gmra.mxu1 %v4810_v61 }
  0x71   :  { %3968 = vmatprep.mubr.f32.mxu1 %v4841_v16  ;;  %v1515_v2 = vand.u32 4294901760, %v1514_v51 }
  0x73   :  { %4003 = vmatprep.mubr.f32.mxu0 %v1515_v2 }
  0x74   :  { %3969 = vmatmul.mubr.f32.gmra.mxu1 %v4852_v53 }
  0x75   :  { %4059 = vmatprep.mubr.f32.mxu1 %v5055_v20 }
  0x82   :  { %v5042_v13 = vpop.permute.xlu0 %140 }
  0x84   :  { %v5044_v17 = vpop.permute.xlu1 %130 }
  0x86   :  { %v5046_v23 = vpop.permute.xlu0 %135 }
  0x88   :  { %v5048_v26 = vpop.permute.xlu1 %125 }
  0x8a   :  { %v121_v27 = vpop.permute.xlu0 %120 }
  0x8e   :  { %v5050_v37 = vpop.permute.xlu1 %115 }
  0x95   :  { %v111_v41 = vpop.permute.xlu0 %110 }
  0x96   :  { %v106_v45 = vpop.permute.xlu1 %105 }
  0x99   :  { %v101_v46 = vpop.permute.xlu0 %100 }
  0x9a   :  { %v96_v47 = vpop.permute.xlu1 %95 }
  0x9d   :  { %v91_v58 = vpop.permute.xlu0 %90 }
  0x9e   :  { %v86_v5 = vpop.permute.xlu1 %85 }
  0xa1   :  { %v81_v9 = vpop.permute.xlu0 %80 }
  0xa2   :  { %v76_v10 = vpop.permute.xlu1 %75 }
  0xa5   :  { %v71_v33 = vpop.permute.xlu0 %70 }
  0xa6   :  { %v66_v49 = vpop.permute.xlu1 %65 }
  0xd1   :  { %v3809_v19 = vpop.f32.mrf.mxu0 }
  0xd2   :  { %v282_v44 = vadd.f32 %v3809_v19, %v71_v33 }
  0xd3   :  { %v271_v38 = vpop.f32.mrf.mxu0 }
  0xd4   :  { %v272_v56 = vadd.f32 %v271_v38, %v66_v49 }
  0xd5   :  { %v3812_v43 = vpop.f32.mrf.mxu0 }
  0xd6   :  { %v302_v55 = vadd.f32 %v3812_v43, %v81_v9 }
  0xd7   :  { %v291_v50 = vpop.f32.mrf.mxu0  ;;  %v3837_v54 = vpop.f32.mrf.mxu1 }
  0xd8   :  { %v509_v60 = vadd.f32 %v3837_v54, %v282_v44  ;;  %v292_v53 = vadd.f32 %v291_v50, %v76_v10 }
  0xd9   :  { %v3815_v61 = vpop.f32.mrf.mxu0  ;;  %v502_v8 = vpop.f32.mrf.mxu1 }
  0xda   :  { %v503_v14 = vadd.f32 %v502_v8, %v272_v56  ;;  %v322_v62 = vadd.f32 %v3815_v61, %v91_v58 }
  0xdb   :  { %v311_v16 = vpop.f32.mrf.mxu0  ;;  %v3840_v52 = vpop.f32.mrf.mxu1 }
  0xdc   :  { %v521_v63 = vadd.f32 %v3840_v52, %v302_v55  ;;  %v312_v24 = vadd.f32 %v311_v16, %v86_v5 }
  0xdd   :  { %v3818_v0 = vpop.f32.mrf.mxu0  ;;  %v514_v6 = vpop.f32.mrf.mxu1 }
  0xde   :  { %v515_v40 = vadd.f32 %v514_v6, %v292_v53  ;;  %v342_v1 = vadd.f32 %v3818_v0, %v101_v46 }
  0xdf   :  { %v331_v57 = vpop.f32.mrf.mxu0  ;;  %v3843_v59 = vpop.f32.mrf.mxu1 }
  0xe0   :  { %v533_v3 = vadd.f32 %v3843_v59, %v322_v62  ;;  %v332_v39 = vadd.f32 %v331_v57, %v96_v47 }
  0xe1   :  { %v3821_v4 = vpop.f32.mrf.mxu0  ;;  %v526_v7 = vpop.f32.mrf.mxu1 }
  0xe2   :  { %v527_v15 = vadd.f32 %v526_v7, %v312_v24  ;;  %v362_v30 = vadd.f32 %v3821_v4, %v111_v41 }
  0xe3   :  { %v351_v28 = vpop.f32.mrf.mxu0  ;;  %v3846_v22 = vpop.f32.mrf.mxu1 }
  0xe4   :  { %v5065_v21 = vadd.f32 %v3846_v22, %v342_v1  ;;  %v352_v32 = vadd.f32 %v351_v28, %v106_v45 }
  0xe5   :  { %v3824_v25 = vpop.f32.mrf.mxu0  ;;  %v538_v11 = vpop.f32.mrf.mxu1 }
  0xe6   :  { %v5067_v29 = vadd.f32 %v538_v11, %v332_v39  ;;  %v382_v34 = vadd.f32 %v3824_v25, %v121_v27 }
  0xe7   :  { %v371_v31 = vpop.f32.mrf.mxu0  ;;  %v3849_v12 = vpop.f32.mrf.mxu1 }
  0xe8   :  { %v5069_v35 = vadd.f32 %v3849_v12, %v362_v30  ;;  %v372_v41 = vadd.f32 %v371_v31, %v5050_v37 }
  0xe9   :  { %v3827_v36 = vpop.f32.mrf.mxu0  ;;  %v550_v46 = vpop.f32.mrf.mxu1 }
  0xea   :  { %v5071_v58 = vadd.f32 %v550_v46, %v352_v32  ;;  %v402_v47 = vadd.f32 %v3827_v36, %v5044_v17 }
  0xeb   :  { %v391_v5 = vpop.f32.mrf.mxu0  ;;  %v3852_v9 = vpop.f32.mrf.mxu1 }
  0xec   :  { %v5075_v10 = vadd.f32 %v3852_v9, %v382_v34  ;;  %v392_v38 = vadd.f32 %v391_v5, %v5048_v26 }
  0xed   :  { %v5077_v18 = vpop.f32.mrf.mxu0  ;;  %v562_v19 = vpop.f32.mrf.mxu1 }
  0xee   :  { %v5079_v33 = vadd.f32 %v562_v19, %v372_v41  ;;  %v422_v48 = vadd.f32 %v5077_v18, %v5042_v13 }
  0xef   :  { %v5081_v27 = vpop.f32.mrf.mxu0  ;;  %v3855_v45 = vpop.f32.mrf.mxu1 }
  0xf0   :  { %v5084_v43 = vadd.f32 %v3855_v45, %v402_v47 }
  0xf1   :  { %v3865_v44 = vpop.f32.mrf.mxu0  ;;  %v574_v50 = vpop.f32.mrf.mxu1 }
  0xf2   :  { %v676_v49 = vadd.f32 %v3865_v44, %v509_v60  ;;  %v5086_v37 = vadd.f32 %v574_v50, %v392_v38 }
  0xf3   :  { %v668_v17 = vpop.f32.mrf.mxu0 }
  0xf4   :  { %v669_v51 = vadd.f32 %v668_v17, %v503_v14  ;;  %v5088_v54 = vpop.f32.mrf.mxu1 }
  0xf5   :  { %v3868_v55 = vpop.f32.mrf.mxu0 }
  0xf6   :  { %v690_v56 = vadd.f32 %v3868_v55, %v521_v63  ;;  %v5090_v61 = vpop.f32.mrf.mxu1 }
  0xf7   :  { %v682_v2 = vpop.f32.mrf.mxu0 }
  0xf8   :  { %v683_v8 = vadd.f32 %v682_v2, %v515_v40  ;;  %v3893_v16 = vpop.f32.mrf.mxu1 }
  0xf9   :  { %v5092_v52 = vadd.f32 %v3893_v16, %v676_v49  ;;  %v3871_v26 = vpop.f32.mrf.mxu0 }
  0xfa   :  { %v704_v53 = vadd.f32 %v3871_v26, %v533_v3  ;;  %v848_v62 = vpop.f32.mrf.mxu1 }
  0xfb   :  { %6380 = vst [vmem:[#allocation8_spill] sm:$0xff] %v5092_v52  ;;  %v5094_v60 = vadd.f32 %v848_v62, %v669_v51  ;;  %v696_v0 = vpop.f32.mrf.mxu0 }
  0xfc   :  { %v697_v6 = vadd.f32 %v696_v0, %v527_v15  ;;  %v3896_v57 = vpop.f32.mrf.mxu1 }
  0xfd   :  { %6381 = vst [vmem:[#allocation9_spill] sm:$0xff] %v5094_v60  ;;  %v5096_v14 = vadd.f32 %v3896_v57, %v690_v56  ;;  %v3874_v59 = vpop.f32.mrf.mxu0  ;;  %v412_v60 = vadd.f32 %v5081_v27, %v5046_v23 }
  0xfe   :  { %v864_v24 = vpop.f32.mrf.mxu1 }
  0xff   :  { %v5098_v63 = vadd.f32 %v864_v24, %v683_v8  ;;  %v5100_v1 = vpop.f32.mrf.mxu0  ;;  %v587_v13 = vadd.f32 %v5090_v61, %v412_v60 }
 0x100   :  { %v3899_v40 = vpop.f32.mrf.mxu1 }
 0x101   :  { %6382 = vst [vmem:[#allocation10_spill] sm:$0xff] %v5098_v63  ;;  %v5102_v4 = vadd.f32 %v3899_v40, %v704_v53  ;;  %v3877_v7 = vpop.f32.mrf.mxu0 }
 0x102   :  { %v880_v28 = vpop.f32.mrf.mxu1  ;;  %v732_v18 = vadd.f32 %v3877_v7, %v5069_v35 }
 0x103   :  { %v5104_v3 = vadd.f32 %v880_v28, %v697_v6  ;;  %v724_v22 = vpop.f32.mrf.mxu0 }
 0x104   :  { %v5106_v39 = vpop.f32.mrf.mxu1 }
 0x105   :  { %v3880_v15 = vpop.f32.mrf.mxu0 }
 0x106   :  { %v5108_v30 = vpop.f32.mrf.mxu1  ;;  %v746_v42 = vadd.f32 %v3880_v15, %v5075_v10  ;;  %v718_v10 = vadd.f32 %v3874_v59, %v5065_v21  ;;  %v711_v21 = vadd.f32 %v5100_v1, %v5067_v29 }
 0x107   :  { %v738_v25 = vpop.f32.mrf.mxu0 }
 0x108   :  { %v3905_v11 = vpop.f32.mrf.mxu1 }
 0x109   :  { %v3883_v31 = vpop.f32.mrf.mxu0 }
 0x10a   :  { %v5110_v12 = vpop.f32.mrf.mxu1 }
 0x10b   :  { %v752_v32 = vpop.f32.mrf.mxu0 }
 0x10c   :  { %v3908_v34 = vpop.f32.mrf.mxu1 }
 0x10d   :  { %v3886_v36 = vpop.f32.mrf.mxu0 }
 0x10e   :  { %v928_v46 = vpop.f32.mrf.mxu1 }
 0x10f   :  { %v766_v5 = vpop.f32.mrf.mxu0 }
 0x110   :  { %v3911_v9 = vpop.f32.mrf.mxu1 }
 0x111   :  { %v5112_v41 = vpop.f32.mrf.mxu0 }
 0x112   :  { %6383 = vst [vmem:[#allocation11_spill] sm:$0xff] %v5112_v41  ;;  %v944_v47 = vpop.f32.mrf.mxu1  ;;  %v937_v41 = vadd.f32 %v3908_v34, %v746_v42 }
 0x113   :  { %v5114_v19 = vpop.f32.mrf.mxu0 }
 0x114   :  { %6384 = vst [vmem:[#allocation12_spill] sm:$0xff] %v5114_v19  ;;  %v3914_v45 = vpop.f32.mrf.mxu1 }
 0x115   :  { %v5116_v38 = vpop.f32.mrf.mxu0 }
 0x116   :  { %v960_v44 = vpop.f32.mrf.mxu1 }
 0x117   :  { %v5118_v49 = vpop.f32.mrf.mxu0 }
 0x118   :  { %6385 = vst [vmem:[#allocation13_spill] sm:$0xff] %v5118_v49  ;;  %v5120_v50 = vpop.f32.mrf.mxu1 }
 0x119   :  { %6386 = vst [vmem:[#allocation14_spill] sm:$0xff] %v5120_v50  ;;  %v5122_v17 = vpop.f32.mrf.mxu0  ;;  %v760_v50 = vadd.f32 %v3883_v31, %v5084_v43 }
 0x11a   :  { %v5124_v51 = vpop.f32.mrf.mxu1 }
 0x11b   :  { %6387 = vst [vmem:[#allocation15_spill] sm:$0xff] %v5124_v51  ;;  %v5126_v55 = vpop.f32.mrf.mxu0  ;;  %v953_v49 = vadd.f32 %v3911_v9, %v760_v50 }
 0x11c   :  { %v5128_v56 = vpop.f32.mrf.mxu1 }
 0x11d   :  { %6388 = vst [vmem:[#allocation16_spill] sm:$0xff] %v5128_v56  ;;  %v5130_v2 = vpop.f32.mrf.mxu0  ;;  %v739_v56 = vadd.f32 %v738_v25, %v5079_v33  ;;  %v767_v33 = vadd.f32 %v766_v5, %v587_v13 }
 0x11e   :  { %v5132_v8 = vpop.f32.mrf.mxu1 }
 0x11f   :  { %6389 = vst [vmem:[#allocation17_spill] sm:$0xff] %v5132_v8  ;;  %v5134_v16 = vpop.f32.mrf.mxu0  ;;  %v593_v8 = vadd.f32 %v5088_v54, %v422_v48  ;;  %v929_v23 = vadd.f32 %v928_v46, %v739_v56  ;;  %v725_v48 = vadd.f32 %v724_v22, %v5071_v58  ;;  %v921_v54 = vadd.f32 %v3905_v11, %v732_v18 }
 0x120   :  { %v5136_v26 = vpop.f32.mrf.mxu1  ;;  %v961_v59 = vadd.f32 %v960_v44, %v767_v33 }
 0x121   :  { %v3933_v53 = vpop.f32.mrf.mxu0  ;;  %v774_v63 = vadd.f32 %v3886_v36, %v593_v8  ;;  %v913_v35 = vadd.f32 %v5110_v12, %v725_v48  ;;  %v897_v12 = vadd.f32 %v5108_v30, %v711_v21 }
 0x122   :  { %v5138_v62 = vpop.f32.mrf.mxu1  ;;  %v1100_v7 = vadd.f32 %v3933_v53, %v921_v54 }
 0x123   :  { %6390 = vst [vmem:[#allocation18_spill] sm:$0xff] %v5138_v62  ;;  %v1093_v0 = vpop.f32.mrf.mxu0  ;;  %v753_v62 = vadd.f32 %v752_v32, %v5086_v37  ;;  %v969_v32 = vadd.f32 %v3914_v45, %v774_v63  ;;  %v1082_v53 = vadd.f32 %v5134_v16, %v897_v12 }
 0x124   :  { %v5140_v6 = vpop.f32.mrf.mxu1  ;;  %v1094_v11 = vadd.f32 %v1093_v0, %v913_v35 }
 0x125   :  { %v3936_v57 = vpop.f32.mrf.mxu0  ;;  %v945_v42 = vadd.f32 %v944_v47, %v753_v62 }
 0x126   :  { %v5142_v24 = vpop.f32.mrf.mxu1  ;;  %v1112_v43 = vadd.f32 %v3936_v57, %v937_v41 }
 0x127   :  { %v1105_v40 = vpop.f32.mrf.mxu0  ;;  %v5183_v16 = vadd.f32 %v5142_v24, %v1082_v53  ;;  %v6403_v53 = vld [vmem:[#allocation9_spill] sm:$0xff] }
 0x128   :  { %v3961_v28 = vpop.f32.mrf.mxu1  ;;  %v1106_v34 = vadd.f32 %v1105_v40, %v929_v23 }
 0x129   :  { %v3939_v20 = vpop.f32.mrf.mxu0  ;;  %v1263_v63 = vadd.f32 %v3961_v28, %v1100_v7  ;;  %v1076_v28 = vadd.f32 %v5122_v17, %v5102_v4  ;;  %v1308_v48 = vmax.f32 %v5183_v16, 0.0 }
 0x12a   :  { %v1256_v51 = vpop.f32.mrf.mxu1  ;;  %v1124_v27 = vadd.f32 %v3939_v20, %v953_v49 }
 0x12b   :  { %v1117_v19 = vpop.f32.mrf.mxu0  ;;  %v1257_v44 = vadd.f32 %v1256_v51, %v1094_v11  ;;  %v1311_v0 = vmax.f32 %v1263_v63, 0.0  ;;  %v5199_v4 = vadd.f32 %v5136_v26, %v1076_v28  ;;  %v6393_v26 = vld [vmem:[#allocation13_spill] sm:$0xff] }
 0x12c   :  { %v3964_v52 = vpop.f32.mrf.mxu1  ;;  %v1118_v61 = vadd.f32 %v1117_v19, %v945_v42  ;;  %v6394_v42 = vld [vmem:[#allocation18_spill] sm:$0xff] }
 0x12d   :  { %v3942_v15 = vpop.f32.mrf.mxu0  ;;  %v1275_v25 = vadd.f32 %v3964_v52, %v1112_v43  ;;  %v905_v52 = vadd.f32 %v5106_v39, %v718_v10  ;;  %v5202_v17 = vand.u32 4294901760, %v1311_v0 }
 0x12e   :  { %v1268_v31 = vpop.f32.mrf.mxu1  ;;  %v1136_v20 = vadd.f32 %v3942_v15, %v969_v32 }
 0x12f   :  { %v1129_v36 = vpop.f32.mrf.mxu0  ;;  %v1269_v9 = vadd.f32 %v1268_v31, %v1106_v34  ;;  %v1313_v5 = vmax.f32 %v1275_v25, 0.0  ;;  %v1088_v45 = vadd.f32 %v5130_v2, %v905_v52  ;;  %v1064_v2 = vadd.f32 %v5116_v38, %v5096_v14  ;;  %v6396_v34 = vld [vmem:[#allocation16_spill] sm:$0xff] }
 0x130   :  { %v3967_v37 = vpop.f32.mrf.mxu1  ;;  %v1130_v47 = vadd.f32 %v1129_v36, %v961_v59  ;;  %v1070_v14 = vadd.f32 %v5126_v55, %v5104_v3  ;;  %v6392_v55 = vld [vmem:[#allocation10_spill] sm:$0xff]  ;;  %v5246_v35 = vsub.f32 %v1311_v0, %v5202_v17  ;;  %v5264_v52 = vand.u32 4294901760, %v1308_v48 }
 0x131   :  { %v1287_v60 = vadd.f32 %v3967_v37, %v1124_v27  ;;  %v1312_v50 = vmax.f32 %v1269_v9, 0.0  ;;  %v5169_v62 = vadd.f32 %v5140_v6, %v1088_v45  ;;  %v5171_v57 = vand.u32 4294901760, %v1313_v5  ;;  %v6398_v9 = vld [vmem:[#allocation17_spill] sm:$0xff] }
 0x132   :  { %v1280_v46 = vpop.f32.mrf.mxu1  ;;  %v1310_v6 = vmax.f32 %v1257_v44, 0.0  ;;  %v1058_v23 = vadd.f32 %v6393_v26, %v6392_v55  ;;  %v5221_v27 = vadd.f32 %v6394_v42, %v1070_v14  ;;  %v1320_v55 = vld [vmem:[%s6331_s3 + $0x10] sm:$0xff] }
 0x133   :  { %v1315_v58 = vmax.f32 %v1287_v60, 0.0  ;;  %v1281_v22 = vadd.f32 %v1280_v46, %v1118_v61  ;;  %v5185_v13 = vand.u32 4294901760, %v1312_v50  ;;  %v1309_v38 = vmax.f32 %v5169_v62, 0.0  ;;  %v6404_v62 = vld [vmem:[#allocation12_spill] sm:$0xff]  ;;  %v6407_v26 = vld [vmem:[#allocation15_spill] sm:$0xff] }
 0x134   :  { %v3970_v41 = vpop.f32.mrf.mxu1  ;;  %v5206_v24 = vsub.f32 %v1313_v5, %v5171_v57  ;;  %v5224_v54 = vand.u32 4294901760, %v1310_v6  ;;  %v5240_v61 = vadd.f32 %v6396_v34, %v1064_v2  ;;  %v1307_v60 = vmax.f32 %v5199_v4, 0.0 }
 0x135   :  { %v5161_v19 = vand.u32 4294901760, %v1315_v58  ;;  %v1314_v29 = vmax.f32 %v1281_v22, 0.0  ;;  %v1299_v1 = vadd.f32 %v3970_v41, %v1136_v20  ;;  %v5228_v33 = vsub.f32 %v1312_v50, %v5185_v13  ;;  %v1319_v20 = vld [vmem:[%s6331_s3 + $0x8] sm:$0xff] }
 0x136   :  { %v1292_v49 = vpop.f32.mrf.mxu1  ;;  %v5243_v21 = vand.u32 4294901760, %v1309_v38  ;;  %v5255_v46 = vand.u32 4294901760, %v5206_v24  ;;  %v1306_v22 = vmax.f32 %v5221_v27, 0.0  ;;  %v5268_v11 = vsub.f32 %v1310_v6, %v5224_v54 }
 0x137   :  { %v5165_v56 = vand.u32 4294901760, %v1314_v29  ;;  %v1317_v8 = vmax.f32 %v1299_v1, 0.0  ;;  %v1293_v39 = vadd.f32 %v1292_v49, %v1130_v47  ;;  %v5174_v40 = vsub.f32 %v1315_v58, %v5161_v19  ;;  %v6400_v47 = vld [vmem:[#allocation8_spill] sm:$0xff] }
 0x138   :  { %6397 = vst [vmem:[#allocation13_spill] sm:$0xff] %v5255_v46  ;;  %v5261_v58 = vadd.f32 %v6398_v9, %v1058_v23  ;;  %v5274_v41 = vand.u32 4294901760, %v5228_v33  ;;  %v1305_v12 = vmax.f32 %v5240_v61, 0.0  ;;  %v5279_v45 = vand.u32 4294901760, %v1307_v60  ;;  %v1321_v61 = vld [vmem:[%s6331_s3 + $0x18] sm:$0xff] }
 0x139   :  { %v5176_v30 = vand.u32 4294901760, %v1317_v8  ;;  %v1316_v51 = vmax.f32 %v1293_v39, 0.0  ;;  %v5188_v10 = vsub.f32 %v1314_v29, %v5165_v56  ;;  %v5216_v3 = vand.u32 4294901760, %v5174_v40  ;;  %v6401_v29 = vld [vmem:[#allocation11_spill] sm:$0xff] }
 0x13a   :  { %6399 = vst [vmem:[#allocation18_spill] sm:$0xff] %v5274_v41  ;;  %v1052_v1 = vadd.f32 %v6401_v29, %v6400_v47  ;;  %v5282_v44 = vand.u32 4294901760, %v1319_v20  ;;  %v5285_v49 = vsub.f32 %v1309_v38, %v5243_v21  ;;  %v5291_v39 = vand.u32 4294901760, %v5246_v35 }
 0x13b   :  { %v5191_v18 = vsub.f32 %v1317_v8, %v5176_v30  ;;  %v5193_v43 = vand.u32 4294901760, %v1316_v51  ;;  %3971 = vmatprep.subr.mxu0 %v5176_v30  ;;  %6391 = vst [vmem:[#allocation19_spill] sm:$0xff] %v5216_v3  ;;  %v5237_v32 = vand.u32 4294901760, %v5188_v10  ;;  %v1689_v36 = vsub.f32 %v5174_v40, %v5216_v3 }
 0x13c   :  { %3972 = vmatpush3.msra.mxu0 %v5176_v30  ;;  %v1703_v8 = vsub.f32 %v5206_v24, %v5255_v46  ;;  %6402 = vst [vmem:[#allocation16_spill] sm:$0xff] %v5291_v39  ;;  %v1046_v0 = vadd.f32 %v6404_v62, %v6403_v53  ;;  %v1304_v28 = vmax.f32 %v5261_v58, 0.0  ;;  %v5299_v16 = vand.u32 4294901760, %v1306_v22 }
 0x13d   :  { %v5209_v15 = vsub.f32 %v1316_v51, %v5193_v43  ;;  %3973 = vmatprep.subr.mxu0 %v5193_v43  ;;  %v5213_v31 = vand.u32 4294901760, %v5191_v18  ;;  %6395 = vst [vmem:[#allocation10_spill] sm:$0xff] %v5237_v32  ;;  %v1696_v5 = vsub.f32 %v5188_v10, %v5237_v32  ;;  %v1690_v50 = vand.u32 4294901760, %v1689_v36  ;;  %v6405_v51 = vld [vmem:[#allocation14_spill] sm:$0xff] }
 0x13e   :  { %3974 = vmatpush3.msra.mxu0 %v5193_v43  ;;  %v5296_v2 = vadd.f32 %v6405_v51, %v1052_v1  ;;  %v5303_v6 = vsub.f32 %v1308_v48, %v5264_v52  ;;  %v1710_v4 = vsub.f32 %v5228_v33, %v5274_v41  ;;  %v5309_v38 = vand.u32 4294901760, %v5268_v11  ;;  %v1323_v51 = vld [vmem:[%s6331_s3 + $0x28] sm:$0xff] }
 0x13f   :  { %3975 = vmatprep.subr.mxu0 %v5161_v19  ;;  %v1675_v25 = vsub.f32 %v5191_v18, %v5213_v31  ;;  %v5234_v37 = vand.u32 4294901760, %v5209_v15  ;;  %v1697_v14 = vand.u32 4294901760, %v1696_v5  ;;  %v5315_v23 = vadd.f32 %v6407_v26, %v1046_v0  ;;  %v1327_v32 = vld [vmem:[%s6331_s3 + $0x48] sm:$0xff] }
 0x140   :  { %3976 = vmatpush3.msra.mxu0 %v5161_v19  ;;  %6406 = vst [vmem:[#allocation17_spill] sm:$0xff] %v5309_v38  ;;  %v5317_v42 = vand.u32 4294901760, %v1305_v12  ;;  %v5321_v27 = vsub.f32 %v1307_v60, %v5279_v45  ;;  %v1704_v48 = vand.u32 4294901760, %v1703_v8  ;;  %v5327_v34 = vand.u32 4294901760, %v5285_v49 }
 0x141   :  { %3977 = vmatprep.subr.mxu0 %v5165_v56  ;;  %v1676_v59 = vand.u32 4294901760, %v1675_v25  ;;  %v1682_v7 = vsub.f32 %v5209_v15, %v5234_v37  ;;  %v1717_v25 = vsub.f32 %v5246_v35, %v5291_v39  ;;  %v5337_v60 = vsub.f32 %v1319_v20, %v5282_v44  ;;  %v1322_v20 = vld [vmem:[%s6331_s3 + $0x20] sm:$0xff] }
 0x142   :  { %3978 = vmatpush3.msra.mxu0 %v5165_v56  ;;  %6408 = vst [vmem:[#allocation8_spill] sm:$0xff] %v5327_v34  ;;  %v5339_v36 = vand.u32 4294901760, %v1320_v55  ;;  %v5342_v9 = vsub.f32 %v1306_v22, %v5299_v16  ;;  %v1711_v58 = vand.u32 4294901760, %v1710_v4  ;;  %v5348_v5 = vand.u32 4294901760, %v5303_v6 }
 0x143   :  { %3979 = vmatprep.subr.mxu0 %v5171_v57  ;;  %4027 = vmatprep.subr.mxu1 %v1676_v59  ;;  %v1683_v63 = vand.u32 4294901760, %v1682_v7  ;;  %v5333_v7 = vand.u32 4294901760, %v1304_v28  ;;  %v1302_v47 = vmax.f32 %v5315_v23, 0.0  ;;  %v5355_v22 = vand.u32 4294901760, %v1321_v61 }
 0x144   :  { %3980 = vmatpush3.msra.mxu0 %v5171_v57  ;;  %4028 = vmatpush3.msra.mxu1 %v1676_v59  ;;  %v1303_v59 = vmax.f32 %v5296_v2, 0.0  ;;  %6409 = vst [vmem:[#allocation11_spill] sm:$0xff] %v5348_v5  ;;  %v5358_v29 = vsub.f32 %v1305_v12, %v5317_v42  ;;  %v1718_v1 = vand.u32 4294901760, %v1717_v25  ;;  %v5364_v8 = vand.u32 4294901760, %v5321_v27 }
 0x145   :  { %3981 = vmatprep.subr.mxu0 %v5185_v13  ;;  %4029 = vmatprep.subr.mxu1 %v1683_v63  ;;  %6410 = vst [vmem:[#allocation9_spill] sm:$0xff] %v5355_v22  ;;  %v6345_v62 = vand.u32 4294901760, %v5337_v60  ;;  %v5371_v12 = vsub.f32 %v1320_v55, %v5339_v36  ;;  %v5373_v0 = vand.u32 4294901760, %v1322_v20  ;;  %v5379_v2 = vsub.f32 %v1304_v28, %v5333_v7 }
 0x146   :  { %3982 = vmatpush3.msra.mxu0 %v5185_v13  ;;  %4030 = vmatpush3.msra.mxu1 %v1683_v63  ;;  %v1724_v63 = vsub.f32 %v5268_v11, %v5309_v38  ;;  %6411 = vst [vmem:[#allocation12_spill] sm:$0xff] %v5364_v8  ;;  %v5366_v53 = vand.u32 4294901760, %v1303_v59  ;;  %v1738_v4 = vsub.f32 %v5303_v6, %v5348_v5  ;;  %v5385_v26 = vand.u32 4294901760, %v5342_v9 }
 0x147   :  { %3983 = vmatprep.subr.mxu0 %v5202_v17  ;;  %4031 = vmatprep.subr.mxu1 %v1690_v50  ;;  %v5387_v55 = vand.u32 4294901760, %v1302_v47  ;;  %v5391_v23 = vsub.f32 %v1321_v61, %v5355_v22  ;;  %v5397_v25 = vand.u32 4294901760, %v5358_v29  ;;  %v1524_v61 = vsub.f32 %v5337_v60, %v6345_v62 }
 0x148   :  { %3984 = vmatpush3.msra.mxu0 %v5202_v17  ;;  %4032 = vmatpush3.msra.mxu1 %v1690_v50  ;;  %v1731_v50 = vsub.f32 %v5285_v49, %v5327_v34  ;;  %6412 = vst [vmem:[#allocation14_spill] sm:$0xff] %v5385_v26  ;;  %v5416_v5 = vand.u32 4294901760, %v5379_v2 }
 0x149   :  { %3985 = vmatprep.subr.mxu0 %v5224_v54  ;;  %4033 = vmatprep.subr.mxu1 %v1697_v14  ;;  %6413 = vst [vmem:[#allocation15_spill] sm:$0xff] %v5387_v55  ;;  %6414 = vst [vmem:[#allocation20_spill] sm:$0xff] %v5397_v25  ;;  %v5422_v62 = vsub.f32 %v1302_v47, %v5387_v55 }
 0x14a   :  { %3986 = vmatpush3.msra.mxu0 %v5224_v54  ;;  %4034 = vmatpush3.msra.mxu1 %v1697_v14  ;;  %v1725_v14 = vand.u32 4294901760, %v1724_v63  ;;  %v1732_v28 = vand.u32 4294901760, %v1731_v50  ;;  %v5402_v63 = vsub.f32 %v1303_v59, %v5366_v53  ;;  %v1324_v50 = vld [vmem:[%s6331_s3 + $0x30] sm:$0xff]  ;;  %v1752_v59 = vsub.f32 %v5342_v9, %v5385_v26  ;;  %6415 = vst [vmem:[#allocation21_spill] sm:$0xff] %v5416_v5 }
 0x14b   :  { %3987 = vmatprep.subr.mxu0 %v5243_v21  ;;  %4035 = vmatprep.subr.mxu1 %v1704_v48  ;;  %v5435_v47 = vand.u32 4294901760, %v1324_v50 }
 0x14c   :  { %3988 = vmatpush3.msra.mxu0 %v5243_v21  ;;  %4036 = vmatpush3.msra.mxu1 %v1704_v48  ;;  %v1745_v48 = vsub.f32 %v5321_v27, %v5364_v8  ;;  %v1739_v8 = vand.u32 4294901760, %v1738_v4  ;;  %v1325_v4 = vld [vmem:[%s6331_s3 + $0x38] sm:$0xff]  ;;  %v5442_v39 = vand.u32 4294901760, %v5402_v63 }
 0x14d   :  { %3989 = vmatprep.subr.mxu0 %v5264_v52  ;;  %4037 = vmatprep.subr.mxu1 %v1711_v58  ;;  %v5448_v41 = vand.u32 4294901760, %v1325_v4  ;;  %v5463_v46 = vsub.f32 %v1324_v50, %v5435_v47 }
 0x14e   :  { %3990 = vmatpush3.msra.mxu0 %v5264_v52  ;;  %4038 = vmatpush3.msra.mxu1 %v1711_v58  ;;  %v5399_v58 = vand.u32 4294901760, %v1323_v51  ;;  %v1746_v26 = vand.u32 4294901760, %v1745_v48  ;;  %6417 = vst [vmem:[#allocation22_spill] sm:$0xff] %v5442_v39  ;;  %v1753_v48 = vand.u32 4294901760, %v1752_v59  ;;  %v1326_v59 = vld [vmem:[%s6331_s3 + $0x40] sm:$0xff] }
 0x14f   :  { %3991 = vmatprep.subr.mxu0 %v5279_v45  ;;  %4039 = vmatprep.subr.mxu1 %v1718_v1  ;;  %v5475_v50 = vsub.f32 %v1325_v4, %v5448_v41  ;;  %v5487_v4 = vand.u32 4294901760, %v1327_v32 }
 0x150   :  { %3992 = vmatpush3.msra.mxu0 %v5279_v45  ;;  %4040 = vmatpush3.msra.mxu1 %v1718_v1  ;;  %v5433_v34 = vsub.f32 %v1323_v51, %v5399_v58  ;;  %v6416_v1 = vand.u32 4294901760, %v5371_v12  ;;  %v1766_v51 = vsub.f32 %v5379_v2, %v5416_v5 }
 0x151   :  { %3993 = vmatprep.subr.mxu0 %v5299_v16  ;;  %4041 = vmatprep.subr.mxu1 %v1725_v14 }
 0x152   :  { %3994 = vmatpush3.msra.mxu0 %v5299_v16  ;;  %4042 = vmatpush3.msra.mxu1 %v1725_v14  ;;  %v5419_v14 = vsub.f32 %v1322_v20, %v5373_v0  ;;  %v1759_v20 = vsub.f32 %v5358_v29, %v5397_v25  ;;  %v1534_v38 = vsub.f32 %v5371_v12, %v6416_v1  ;;  %v5455_v1 = vand.u32 4294901760, %v5422_v62 }
 0x153   :  { %3995 = vmatprep.subr.mxu0 %v5317_v42  ;;  %4043 = vmatprep.subr.mxu1 %v1732_v28  ;;  %v1767_v3 = vand.u32 4294901760, %v1766_v51 }
 0x154   :  { %3996 = vmatpush3.msra.mxu0 %v5317_v42  ;;  %4044 = vmatpush3.msra.mxu1 %v1732_v28  ;;  %v1525_v28 = vand.u32 4294901760, %v1524_v61  ;;  %v1760_v25 = vand.u32 4294901760, %v1759_v20  ;;  %v6419_v20 = vand.u32 4294901760, %v5419_v14 }
 0x155   :  { %3997 = vmatprep.subr.mxu0 %v5333_v7  ;;  %4045 = vmatprep.subr.mxu1 %v1739_v8 }
 0x156   :  { %3998 = vmatpush3.msra.mxu0 %v5333_v7  ;;  %4046 = vmatpush3.msra.mxu1 %v1739_v8  ;;  %v6418_v8 = vand.u32 4294901760, %v5391_v23  ;;  %v1554_v5 = vsub.f32 %v5419_v14, %v6419_v20 }
 0x157   :  { %3999 = vmatprep.subr.mxu0 %v5366_v53  ;;  %4047 = vmatprep.subr.mxu1 %v1746_v26 }
 0x158   :  { %4000 = vmatpush3.msra.mxu0 %v5366_v53  ;;  %4048 = vmatpush3.msra.mxu1 %v1746_v26  ;;  %v1544_v61 = vsub.f32 %v5391_v23, %v6418_v8  ;;  %v1535_v26 = vand.u32 4294901760, %v1534_v38  ;;  %v1773_v8 = vsub.f32 %v5402_v63, %v5442_v39 }
 0x159   :  { %4001 = vmatprep.subr.mxu0 %v5387_v55  ;;  %4049 = vmatprep.subr.mxu1 %v1753_v48 }
 0x15a   :  { %4002 = vmatpush3.msra.mxu0 %v5387_v55  ;;  %4050 = vmatpush3.msra.mxu1 %v1753_v48  ;;  %v5477_v55 = vand.u32 4294901760, %v1326_v59  ;;  %v1545_v38 = vand.u32 4294901760, %v1544_v61  ;;  %v1780_v48 = vsub.f32 %v5422_v62, %v5455_v1  ;;  %v1774_v39 = vand.u32 4294901760, %v1773_v8 }
 0x15b   :  { %4004 = vmatmul.mubr.f32.vlgmr.msra.gmra.mxu0 %v1525_v28  ;;  %4051 = vmatprep.subr.mxu1 %v1760_v25  ;;  %v6420_v28 = vand.u32 4294901760, %v5433_v34  ;;  %v6372_v61 = vand.u32 4294901760, %v5475_v50 }
 0x15c   :  { %4083 = vmatprep.subr.mxu0 %v5191_v18  ;;  %4052 = vmatpush3.msra.mxu1 %v1760_v25  ;;  %v1328_v25 = vld [vmem:[%s6331_s3 + $0x50] sm:$0xff]  ;;  %v1781_v20 = vand.u32 4294901760, %v1780_v48 }
 0x15d   :  { %4084 = vmatpush3.msra.mxu0 %v5191_v18  ;;  %4053 = vmatprep.subr.mxu1 %v1767_v3  ;;  %v1564_v51 = vsub.f32 %v5433_v34, %v6420_v28  ;;  %v1555_v18 = vand.u32 4294901760, %v1554_v5  ;;  %v5496_v28 = vsub.f32 %v1326_v59, %v5477_v55  ;;  %v5506_v5 = vsub.f32 %v1327_v32, %v5487_v4  ;;  %v1330_v32 = vld [vmem:[%s6331_s3 + $0x60] sm:$0xff] }
 0x15e   :  { %4085 = vmatprep.subr.mxu0 %v5209_v15  ;;  %4006 = vmatprep.mubr.f32.mxu0 %v1535_v26  ;;  %v1329_v26 = vld [vmem:[%s6331_s3 + $0x58] sm:$0xff]  ;;  %v5508_v59 = vand.u32 4294901760, %v1328_v25 }
 0x15f   :  { %4054 = vmatpush3.msra.mxu1 %v1767_v3  ;;  %4086 = vmatpush3.msra.mxu0 %v5209_v15  ;;  %v1565_v8 = vand.u32 4294901760, %v1564_v51  ;;  %v6421_v3 = vand.u32 4294901760, %v5463_v46  ;;  %v5516_v48 = vand.u32 4294901760, %v1329_v26  ;;  %v6371_v51 = vand.u32 4294901760, %v5506_v5 }
 0x160   :  { %4007 = vmatmul.mubr.f32.gmra.mxu0 %v1545_v38  ;;  %4055 = vmatprep.subr.mxu1 %v1774_v39  ;;  %v6370_v38 = vand.u32 4294901760, %v5496_v28 }
 0x161   :  { %4087 = vmatprep.subr.mxu0 %v5174_v40  ;;  %4056 = vmatpush3.msra.mxu1 %v1774_v39  ;;  %v1574_v15 = vsub.f32 %v5463_v46, %v6421_v3  ;;  %v1584_v39 = vsub.f32 %v5475_v50, %v6372_v61  ;;  %v5540_v3 = vand.u32 4294901760, %v1330_v32 }
 0x162   :  { %4088 = vmatpush3.msra.mxu0 %v5174_v40  ;;  %4057 = vmatprep.subr.mxu1 %v1781_v20 }
 0x163   :  { %4089 = vmatprep.subr.mxu0 %v5188_v10  ;;  %4009 = vmatprep.mubr.f32.mxu0 %v1555_v18  ;;  %v1575_v40 = vand.u32 4294901760, %v1574_v15  ;;  %v5525_v18 = vsub.f32 %v1328_v25, %v5508_v59  ;;  %v5538_v25 = vsub.f32 %v1329_v26, %v5516_v48  ;;  %v1332_v26 = vld [vmem:[%s6331_s3 + $0x70] sm:$0xff] }
 0x164   :  { %4058 = vmatpush3.msra.mxu1 %v1781_v20  ;;  %4090 = vmatpush3.msra.mxu0 %v5188_v10  ;;  %v1331_v10 = vld [vmem:[%s6331_s3 + $0x68] sm:$0xff]  ;;  %v1585_v20 = vand.u32 4294901760, %v1584_v39  ;;  %v5574_v61 = vand.u32 4294901760, %v1332_v26 }
 0x165   :  { %4010 = vmatmul.mubr.f32.gmra.mxu0 %v1565_v8  ;;  %4060 = vmatmul.mubr.f32.vlgmr.msra.gmra.mxu1 %v5282_v44  ;;  %v1594_v8 = vsub.f32 %v5496_v28, %v6370_v38  ;;  %v6375_v15 = vand.u32 4294901760, %v5525_v18  ;;  %v5549_v39 = vand.u32 4294901760, %v1331_v10  ;;  %v1623_v38 = vand.u32 4294901760, %v5538_v25 }
 0x166   :  { %4091 = vmatprep.subr.mxu0 %v5206_v24  ;;  %4139 = vmatprep.subr.mxu1 %v5176_v30 }
 0x167   :  { %4092 = vmatpush3.msra.mxu0 %v5206_v24  ;;  %4140 = vmatpush3.msra.mxu1 %v5176_v30  ;;  %v1604_v24 = vsub.f32 %v5506_v5, %v6371_v51  ;;  %v5559_v51 = vsub.f32 %v1330_v32, %v5540_v3  ;;  %v5572_v32 = vsub.f32 %v1331_v10, %v5549_v39 }
 0x168   :  { %4093 = vmatprep.subr.mxu0 %v5228_v33  ;;  %4141 = vmatprep.subr.mxu1 %v5193_v43 }
 0x169   :  { %4012 = vmatprep.mubr.f32.mxu0 %v1575_v40  ;;  %4062 = vmatprep.mubr.f32.mxu1 %v5339_v36  ;;  %v1595_v40 = vand.u32 4294901760, %v1594_v8  ;;  %v1614_v8 = vsub.f32 %v5525_v18, %v6375_v15  ;;  %v5590_v15 = vsub.f32 %v1332_v26, %v5574_v61 }
 0x16a   :  { %4094 = vmatpush3.msra.mxu0 %v5228_v33  ;;  %4142 = vmatpush3.msra.mxu1 %v5193_v43  ;;  %v1333_v33 = vld [vmem:[%s6331_s3 + $0x78] sm:$0xff] }
 0x16b   :  { %4013 = vmatmul.mubr.f32.gmra.mxu0 %v1585_v20  ;;  %4063 = vmatmul.mubr.f32.gmra.mxu1 %v5355_v22  ;;  %v1605_v20 = vand.u32 4294901760, %v1604_v24  ;;  %v1633_v24 = vand.u32 4294901760, %v5559_v51  ;;  %v5583_v22 = vand.u32 4294901760, %v1333_v33  ;;  %v1615_v10 = vand.u32 4294901760, %v1614_v8 }
 0x16c   :  { %4095 = vmatprep.subr.mxu0 %v5246_v35  ;;  %4143 = vmatprep.subr.mxu1 %v5161_v19  ;;  %v1653_v26 = vand.u32 4294901760, %v5590_v15 }
 0x16d   :  { %4096 = vmatpush3.msra.mxu0 %v5246_v35  ;;  %4144 = vmatpush3.msra.mxu1 %v5161_v19  ;;  %v1624_v35 = vsub.f32 %v5538_v25, %v1623_v38  ;;  %v5600_v8 = vsub.f32 %v1333_v33, %v5583_v22 }
 0x16e   :  { %4097 = vmatprep.subr.mxu0 %v5268_v11  ;;  %4145 = vmatprep.subr.mxu1 %v5165_v56 }
 0x16f   :  { %4015 = vmatprep.mubr.f32.mxu0 %v1595_v40  ;;  %4065 = vmatprep.mubr.f32.mxu1 %v5373_v0  ;;  %v1643_v40 = vand.u32 4294901760, %v5572_v32 }
 0x170   :  { %4098 = vmatpush3.msra.mxu0 %v5268_v11  ;;  %4146 = vmatpush3.msra.mxu1 %v5165_v56  ;;  %v1625_v11 = vand.u32 4294901760, %v1624_v35  ;;  %v1663_v35 = vand.u32 4294901760, %v5600_v8 }
 0x171   :  { %4016 = vmatmul.mubr.f32.gmra.mxu0 %v1605_v20  ;;  %4066 = vmatmul.mubr.f32.gmra.mxu1 %v5399_v58  ;;  %v1634_v20 = vsub.f32 %v5559_v51, %v1633_v24 }
 0x172   :  { %4099 = vmatprep.subr.mxu0 %v5285_v49  ;;  %4147 = vmatprep.subr.mxu1 %v5171_v57 }
 0x173   :  { %4100 = vmatpush3.msra.mxu0 %v5285_v49  ;;  %4148 = vmatpush3.msra.mxu1 %v5171_v57  ;;  %v1644_v49 = vsub.f32 %v5572_v32, %v1643_v40  ;;  %v1635_v33 = vand.u32 4294901760, %v1634_v20 }
 0x174   :  { %4101 = vmatprep.subr.mxu0 %v5303_v6  ;;  %4149 = vmatprep.subr.mxu1 %v5185_v13 }
 0x175   :  { %4018 = vmatprep.mubr.f32.mxu0 %v1615_v10  ;;  %4068 = vmatprep.mubr.f32.mxu1 %v5435_v47  ;;  %v1645_v10 = vand.u32 4294901760, %v1644_v49  ;;  %v6429_v49 = vld [vmem:[#allocation18_spill] sm:$0xff] }
 0x176   :  { %4102 = vmatpush3.msra.mxu0 %v5303_v6  ;;  %4150 = vmatpush3.msra.mxu1 %v5185_v13  ;;  %v1654_v6 = vsub.f32 %v5590_v15, %v1653_v26 }
 0x177   :  { %4019 = vmatmul.mubr.f32.gmra.mxu0 %v1625_v11  ;;  %4069 = vmatmul.mubr.f32.gmra.mxu1 %v5448_v41  ;;  %v1664_v11 = vsub.f32 %v5600_v8, %v1663_v35 }
 0x178   :  { %4103 = vmatprep.subr.mxu0 %v5321_v27  ;;  %4151 = vmatprep.subr.mxu1 %v5202_v17 }
 0x179   :  { %4104 = vmatpush3.msra.mxu0 %v5321_v27  ;;  %4152 = vmatpush3.msra.mxu1 %v5202_v17  ;;  %v1655_v27 = vand.u32 4294901760, %v1654_v6  ;;  %v1665_v20 = vand.u32 4294901760, %v1664_v11 }
 0x17a   :  { %4105 = vmatprep.subr.mxu0 %v5342_v9  ;;  %4153 = vmatprep.subr.mxu1 %v5224_v54 }
 0x17b   :  { %4021 = vmatprep.mubr.f32.mxu0 %v1635_v33  ;;  %4071 = vmatprep.mubr.f32.mxu1 %v5477_v55  ;;  %v6430_v33 = vand.u32 4294901760, %v5371_v12 }
 0x17c   :  { %4106 = vmatpush3.msra.mxu0 %v5342_v9  ;;  %4154 = vmatpush3.msra.mxu1 %v5224_v54  ;;  %v6422_v9 = vld [vmem:[#allocation7_spill] sm:$0xff] }
 0x17d   :  { %4022 = vmatmul.mubr.f32.gmra.mxu0 %v1645_v10  ;;  %4072 = vmatmul.mubr.f32.gmra.mxu1 %v5487_v4  ;;  %v6432_v10 = vld [vmem:[#allocation16_spill] sm:$0xff] }
 0x17e   :  { %4107 = vmatprep.subr.mxu0 %v5358_v29  ;;  %4155 = vmatprep.subr.mxu1 %v5243_v21 }
 0x17f   :  { %4108 = vmatpush3.msra.mxu0 %v5358_v29  ;;  %4156 = vmatpush3.msra.mxu1 %v5243_v21  ;;  %v6423_v29 = vld [vmem:[#allocation19_spill] sm:$0xff] }
 0x180   :  { %4109 = vmatprep.subr.mxu0 %v5379_v2  ;;  %4157 = vmatprep.subr.mxu1 %v5264_v52 }
 0x181   :  { %4024 = vmatprep.mubr.f32.mxu0 %v1655_v27  ;;  %4074 = vmatprep.mubr.f32.mxu1 %v5508_v59 }
 0x182   :  { %4110 = vmatpush3.msra.mxu0 %v5379_v2  ;;  %4158 = vmatpush3.msra.mxu1 %v5264_v52  ;;  %v6427_v2 = vand.u32 4294901760, %v5337_v60 }
 0x183   :  { %4025 = vmatmul.mubr.f32.gmra.mxu0 %v1665_v20  ;;  %4075 = vmatmul.mubr.f32.gmra.mxu1 %v5516_v48 }
 0x184   :  { %4111 = vmatprep.subr.mxu0 %v5402_v63  ;;  %4159 = vmatprep.subr.mxu1 %v5279_v45 }
 0x185   :  { %4112 = vmatpush3.msra.mxu0 %v5402_v63  ;;  %4160 = vmatpush3.msra.mxu1 %v5279_v45  ;;  %v6428_v63 = vld [vmem:[#allocation13_spill] sm:$0xff] }
 0x186   :  { %4113 = vmatprep.subr.mxu0 %v5422_v62  ;;  %4161 = vmatprep.subr.mxu1 %v5299_v16 }
 0x187   :  { %4077 = vmatprep.mubr.f32.mxu1 %v5540_v3  ;;  %4114 = vmatpush3.msra.mxu0 %v5422_v62  ;;  %v6425_v62 = vld [vmem:[#allocation10_spill] sm:$0xff] }
 0x188   :  { %4115 = vmatprep.mubr.f32.mxu0 %v6422_v9  ;;  %4162 = vmatpush3.msra.mxu1 %v5299_v16 }
 0x189   :  { %4078 = vmatmul.mubr.f32.gmra.mxu1 %v5549_v39  ;;  %4116 = vmatmul.mubr.f32.vlgmr.msra.gmra.mxu0 %v5337_v60  ;;  %v6431_v60 = vand.u32 4294901760, %v5391_v23 }
 0x18a   :  { %4163 = vmatprep.subr.mxu1 %v5317_v42  ;;  %4195 = vmatprep.subr.mxu0 %v5213_v31 }
 0x18b   :  { %4164 = vmatpush3.msra.mxu1 %v5317_v42  ;;  %4196 = vmatpush3.msra.mxu0 %v5213_v31  ;;  %v6424_v31 = vld [vmem:[#allocation15_spill] sm:$0xff] }
 0x18c   :  { %4165 = vmatprep.subr.mxu1 %v5333_v7  ;;  %4197 = vmatprep.subr.mxu0 %v5234_v37 }
 0x18d   :  { %4080 = vmatprep.mubr.f32.mxu1 %v5574_v61  ;;  %4118 = vmatprep.mubr.f32.mxu0 %v5371_v12  ;;  %v6435_v12 = vand.u32 4294901760, %v5433_v34 }
 0x18e   :  { %4166 = vmatpush3.msra.mxu1 %v5333_v7  ;;  %4198 = vmatpush3.msra.mxu0 %v5234_v37  ;;  %v6426_v37 = vand.u32 4294901760, %v6422_v9 }
 0x18f   :  { %4081 = vmatmul.mubr.f32.gmra.mxu1 %v5583_v22  ;;  %4119 = vmatmul.mubr.f32.gmra.mxu0 %v5391_v23  ;;  %v6436_v23 = vld [vmem:[#allocation8_spill] sm:$0xff] }
 0x190   :  { %4167 = vmatprep.subr.mxu1 %v5366_v53  ;;  %4199 = vmatprep.subr.mxu0 %v6423_v29 }
 0x191   :  { %4168 = vmatpush3.msra.mxu1 %v5366_v53  ;;  %4200 = vmatpush3.msra.mxu0 %v6423_v29 }
 0x192   :  { %4169 = vmatprep.subr.mxu1 %v6424_v31  ;;  %4201 = vmatprep.subr.mxu0 %v6425_v62 }
 0x193   :  { %4121 = vmatprep.mubr.f32.mxu0 %v5419_v14  ;;  %4170 = vmatpush3.msra.mxu1 %v6424_v31 }
 0x194   :  { %4171 = vmatprep.mubr.f32.mxu1 %v6426_v37  ;;  %4202 = vmatpush3.msra.mxu0 %v6425_v62 }
 0x195   :  { %4122 = vmatmul.mubr.f32.gmra.mxu0 %v5433_v34  ;;  %4172 = vmatmul.mubr.f32.vlgmr.msra.gmra.mxu1 %v6427_v2  ;;  %v6439_v34 = vand.u32 4294901760, %v5475_v50 }
 0x196   :  { %4203 = vmatprep.subr.mxu0 %v6428_v63  ;;  %4251 = vmatprep.subr.mxu1 %v5176_v30 }
 0x197   :  { %4204 = vmatpush3.msra.mxu0 %v6428_v63  ;;  %4252 = vmatpush3.msra.mxu1 %v5176_v30  ;;  %v6433_v30 = vld [vmem:[#allocation17_spill] sm:$0xff] }
 0x198   :  { %4205 = vmatprep.subr.mxu0 %v6429_v49  ;;  %4253 = vmatprep.subr.mxu1 %v5193_v43 }
 0x199   :  { %4124 = vmatprep.mubr.f32.mxu0 %v5463_v46  ;;  %4174 = vmatprep.mubr.f32.mxu1 %v6430_v33 }
 0x19a   :  { %4206 = vmatpush3.msra.mxu0 %v6429_v49  ;;  %4254 = vmatpush3.msra.mxu1 %v5193_v43  ;;  %v6434_v43 = vand.u32 4294901760, %v5419_v14  ;;  %v6440_v14 = vld [vmem:[#allocation12_spill] sm:$0xff] }
 0x19b   :  { %4125 = vmatmul.mubr.f32.gmra.mxu0 %v5475_v50  ;;  %4175 = vmatmul.mubr.f32.gmra.mxu1 %v6431_v60  ;;  %v6444_v50 = vld [vmem:[#allocation20_spill] sm:$0xff] }
 0x19c   :  { %4207 = vmatprep.subr.mxu0 %v6432_v10  ;;  %4255 = vmatprep.subr.mxu1 %v5161_v19 }
 0x19d   :  { %4208 = vmatpush3.msra.mxu0 %v6432_v10  ;;  %4256 = vmatpush3.msra.mxu1 %v5161_v19  ;;  %v6437_v19 = vld [vmem:[#allocation11_spill] sm:$0xff] }
 0x19e   :  { %4209 = vmatprep.subr.mxu0 %v6433_v30  ;;  %4257 = vmatprep.subr.mxu1 %v5165_v56 }
 0x19f   :  { %4127 = vmatprep.mubr.f32.mxu0 %v5496_v28  ;;  %4177 = vmatprep.mubr.f32.mxu1 %v6434_v43 }
 0x1a0   :  { %4210 = vmatpush3.msra.mxu0 %v6433_v30  ;;  %4258 = vmatpush3.msra.mxu1 %v5165_v56  ;;  %v6438_v56 = vand.u32 4294901760, %v5463_v46  ;;  %v6443_v46 = vand.u32 4294901760, %v5506_v5 }
 0x1a1   :  { %4128 = vmatmul.mubr.f32.gmra.mxu0 %v5506_v5  ;;  %4178 = vmatmul.mubr.f32.gmra.mxu1 %v6435_v12 }
 0x1a2   :  { %4211 = vmatprep.subr.mxu0 %v6436_v23  ;;  %4259 = vmatprep.subr.mxu1 %v5171_v57 }
 0x1a3   :  { %4212 = vmatpush3.msra.mxu0 %v6436_v23  ;;  %4260 = vmatpush3.msra.mxu1 %v5171_v57  ;;  %v6441_v57 = vld [vmem:[#allocation14_spill] sm:$0xff] }
 0x1a4   :  { %4213 = vmatprep.subr.mxu0 %v6437_v19  ;;  %4261 = vmatprep.subr.mxu1 %v5185_v13 }
 0x1a5   :  { %4130 = vmatprep.mubr.f32.mxu0 %v5525_v18  ;;  %4180 = vmatprep.mubr.f32.mxu1 %v6438_v56 }
 0x1a6   :  { %4214 = vmatpush3.msra.mxu0 %v6437_v19  ;;  %4262 = vmatpush3.msra.mxu1 %v5185_v13  ;;  %v6442_v13 = vand.u32 4294901760, %v5496_v28  ;;  %v6447_v28 = vld [vmem:[#allocation22_spill] sm:$0xff] }
 0x1a7   :  { %4131 = vmatmul.mubr.f32.gmra.mxu0 %v5538_v25  ;;  %4181 = vmatmul.mubr.f32.gmra.mxu1 %v6439_v34 }
 0x1a8   :  { %4215 = vmatprep.subr.mxu0 %v6440_v14  ;;  %4263 = vmatprep.subr.mxu1 %v5202_v17 }
 0x1a9   :  { %4216 = vmatpush3.msra.mxu0 %v6440_v14  ;;  %4264 = vmatpush3.msra.mxu1 %v5202_v17  ;;  %v6445_v17 = vld [vmem:[#allocation21_spill] sm:$0xff] }
 0x1aa   :  { %4217 = vmatprep.subr.mxu0 %v6441_v57  ;;  %4265 = vmatprep.subr.mxu1 %v5224_v54 }
 0x1ab   :  { %4133 = vmatprep.mubr.f32.mxu0 %v5559_v51  ;;  %4183 = vmatprep.mubr.f32.mxu1 %v6442_v13 }
 0x1ac   :  { %4218 = vmatpush3.msra.mxu0 %v6441_v57  ;;  %4266 = vmatpush3.msra.mxu1 %v5224_v54  ;;  %v6446_v54 = vand.u32 4294901760, %v5525_v18 }
 0x1ad   :  { %4134 = vmatmul.mubr.f32.gmra.mxu0 %v5572_v32  ;;  %4184 = vmatmul.mubr.f32.gmra.mxu1 %v6443_v46 }
 0x1ae   :  { %4219 = vmatprep.subr.mxu0 %v6444_v50  ;;  %4267 = vmatprep.subr.mxu1 %v5243_v21 }
 0x1af   :  { %4220 = vmatpush3.msra.mxu0 %v6444_v50  ;;  %4268 = vmatpush3.msra.mxu1 %v5243_v21  ;;  %v6448_v21 = vld [vmem:[#allocation6_spill] sm:$0xff] }
 0x1b0   :  { %4221 = vmatprep.subr.mxu0 %v6445_v17  ;;  %4269 = vmatprep.subr.mxu1 %v5264_v52 }
 0x1b1   :  { %4136 = vmatprep.mubr.f32.mxu0 %v5590_v15  ;;  %4186 = vmatprep.mubr.f32.mxu1 %v6446_v54 }
 0x1b2   :  { %4222 = vmatpush3.msra.mxu0 %v6445_v17  ;;  %4270 = vmatpush3.msra.mxu1 %v5264_v52  ;;  %v6449_v52 = vld [vmem:[#allocation9_spill] sm:$0xff] }
 0x1b3   :  { %4137 = vmatmul.mubr.f32.gmra.mxu0 %v5600_v8  ;;  %4187 = vmatmul.mubr.f32.gmra.mxu1 %v1623_v38 }
 0x1b4   :  { %4223 = vmatprep.subr.mxu0 %v6447_v28  ;;  %4271 = vmatprep.subr.mxu1 %v5279_v45 }
 0x1b5   :  { %4224 = vmatpush3.msra.mxu0 %v6447_v28  ;;  %4272 = vmatpush3.msra.mxu1 %v5279_v45  ;;  %v5805_v45 = vpop.permute.xlu1 %1422 }
 0x1b6   :  { %4225 = vmatprep.subr.mxu0 %v5455_v1  ;;  %4273 = vmatprep.subr.mxu1 %v5299_v16 }
 0x1b7   :  { %4189 = vmatprep.mubr.f32.mxu1 %v1633_v24  ;;  %4226 = vmatpush3.msra.mxu0 %v5455_v1 }
 0x1b8   :  { %4227 = vmatprep.mubr.f32.mxu0 %v6448_v21  ;;  %4274 = vmatpush3.msra.mxu1 %v5299_v16 }
 0x1b9   :  { %4190 = vmatmul.mubr.f32.gmra.mxu1 %v1643_v40  ;;  %4228 = vmatmul.mubr.f32.vlgmr.msra.gmra.mxu0 %v5282_v44  ;;  %v5809_v16 = vpop.permute.xlu1 %1412 }
 0x1ba   :  { %4275 = vmatprep.subr.mxu1 %v5317_v42  ;;  %4192 = vmatprep.mubr.f32.mxu1 %v1653_v26 }
 0x1bb   :  { %4276 = vmatpush3.msra.mxu1 %v5317_v42  ;;  %4230 = vmatprep.mubr.f32.mxu0 %v5339_v36 }
 0x1bc   :  { %4277 = vmatprep.subr.mxu1 %v5333_v7 }
 0x1bd   :  { %4278 = vmatpush3.msra.mxu1 %v5333_v7  ;;  %4231 = vmatmul.mubr.f32.gmra.mxu0 %v6449_v52  ;;  %v1403_v7 = vpop.permute.xlu1 %1402 }
 0x1be   :  { %4193 = vmatmul.mubr.f32.gmra.mxu1 %v1663_v35  ;;  %4279 = vmatprep.subr.mxu1 %v5366_v53 }
 0x1bf   :  { %4280 = vmatpush3.msra.mxu1 %v5366_v53  ;;  %4233 = vmatprep.mubr.f32.mxu0 %v5373_v0 }
 0x1c0   :  { %4281 = vmatprep.subr.mxu1 %v6424_v31  ;;  %4283 = vmatprep.mubr.f32.mxu1 %v6448_v21 }
 0x1c1   :  { %4282 = vmatpush3.msra.mxu1 %v6424_v31  ;;  %4234 = vmatmul.mubr.f32.gmra.mxu0 %v5399_v58  ;;  %v1393_v53 = vpop.permute.xlu1 %1392 }
 0x1c2   :  { %4284 = vmatmul.mubr.f32.vlgmr.msra.gmra.mxu1 %v5282_v44  ;;  %4236 = vmatprep.mubr.f32.mxu0 %v5435_v47 }
 0x1c3   :  { %4286 = vmatprep.mubr.f32.mxu1 %v5339_v36 }
 0x1c5   :  { %4237 = vmatmul.mubr.f32.gmra.mxu0 %v5448_v41 }
 0x1c6   :  { %4287 = vmatmul.mubr.f32.gmra.mxu1 %v6449_v52  ;;  %4239 = vmatprep.mubr.f32.mxu0 %v5477_v55 }
 0x1c7   :  { %4289 = vmatprep.mubr.f32.mxu1 %v5373_v0 }
 0x1c9   :  { %4240 = vmatmul.mubr.f32.gmra.mxu0 %v5487_v4 }
 0x1ca   :  { %4290 = vmatmul.mubr.f32.gmra.mxu1 %v5399_v58  ;;  %4242 = vmatprep.mubr.f32.mxu0 %v5508_v59 }
 0x1cb   :  { %4292 = vmatprep.mubr.f32.mxu1 %v5435_v47 }
 0x1cd   :  { %4243 = vmatmul.mubr.f32.gmra.mxu0 %v5516_v48 }
 0x1ce   :  { %4293 = vmatmul.mubr.f32.gmra.mxu1 %v5448_v41  ;;  %4245 = vmatprep.mubr.f32.mxu0 %v5540_v3  ;;  %v5803_v41 = vpop.permute.xlu0 %1427 }
 0x1cf   :  { %4295 = vmatprep.mubr.f32.mxu1 %v5477_v55  ;;  %v1383_v55 = vpop.permute.xlu1 %1382 }
 0x1d1   :  { %4246 = vmatmul.mubr.f32.gmra.mxu0 %v5549_v39 }
 0x1d2   :  { %4296 = vmatmul.mubr.f32.gmra.mxu1 %v5487_v4  ;;  %4248 = vmatprep.mubr.f32.mxu0 %v5574_v61  ;;  %v5807_v44 = vpop.permute.xlu0 %1417 }
 0x1d3   :  { %4298 = vmatprep.mubr.f32.mxu1 %v5508_v59  ;;  %v1373_v47 = vpop.permute.xlu1 %1372 }
 0x1d5   :  { %4249 = vmatmul.mubr.f32.gmra.mxu0 %v5583_v22 }
 0x1d6   :  { %4299 = vmatmul.mubr.f32.gmra.mxu1 %v5516_v48  ;;  %v1408_v42 = vpop.permute.xlu0 %1407 }
 0x1d7   :  { %4301 = vmatprep.mubr.f32.mxu1 %v5540_v3  ;;  %v6376_v3 = vmov 0.0  }
 0x1d8   :  { %4307 = vmatprep.subr.mxu0 %v6376_v3  ;;  %4342 = vmatprep.subr.mxu1 %v6376_v3 }
 0x1d9   :  { %4339 = vmatprep.mubr.msk.f32.mxu0 %vm4549_vm1, %v6376_v3 }
 0x1da   :  { %4302 = vmatmul.mubr.f32.gmra.mxu1 %v5549_v39  ;;  %v1398_v36 = vpop.permute.xlu0 %1397 }
 0x1db   :  { %4304 = vmatprep.mubr.f32.mxu1 %v5574_v61 }
 0x1de   :  { %4305 = vmatmul.mubr.f32.gmra.mxu1 %v5583_v22  ;;  %v1388_v0 = vpop.permute.xlu0 %1387  ;;  %v1363_v22 = vpop.permute.xlu1 %1362 }
 0x1df   :  { %4374 = vmatprep.mubr.msk.f32.mxu1 %vm4549_vm1, %v6376_v3 }
 0x1e2   :  { %v1378_v58 = vpop.permute.xlu0 %1377  ;;  %v1353_v48 = vpop.permute.xlu1 %1352 }
 0x1e6   :  { %v1368_v4 = vpop.permute.xlu0 %1367 }
 0x1ea   :  { %v1358_v38 = vpop.permute.xlu0 %1357 }
 0x21b   :  { %v4005_v1 = vpop.f32.mrf.mxu0 }
 0x21c   :  { %v1528_v51 = vadd.f32 %v4005_v1, %v1358_v38 }
 0x21d   :  { %v1517_v61 = vpop.f32.mrf.mxu0 }
 0x21e   :  { %v1518_v15 = vadd.f32 %v1517_v61, %v1353_v48 }
 0x220   :  { %v4008_v5 = vpop.f32.mrf.mxu0 }
 0x221   :  { %v1548_v8 = vadd.f32 %v4008_v5, %v1368_v4 }
 0x222   :  { %v1537_v59 = vpop.f32.mrf.mxu0 }
 0x223   :  { %v1538_v6 = vadd.f32 %v1537_v59, %v1363_v22 }
 0x225   :  { %v4011_v18 = vpop.f32.mrf.mxu0  ;;  %v4061_v25 = vpop.f32.mrf.mxu1 }
 0x226   :  { %v1825_v39 = vadd.f32 %v4061_v25, %v1528_v51  ;;  %v1568_v29 = vadd.f32 %v4011_v18, %v1378_v58 }
 0x227   :  { %v1557_v32 = vpop.f32.mrf.mxu0  ;;  %v1818_v24 = vpop.f32.mrf.mxu1 }
 0x228   :  { %v1819_v40 = vadd.f32 %v1818_v24, %v1518_v15  ;;  %v1558_v37 = vadd.f32 %v1557_v32, %v1373_v47 }
 0x22b   :  { %v4014_v26 = vpop.f32.mrf.mxu0  ;;  %v4064_v35 = vpop.f32.mrf.mxu1 }
 0x22c   :  { %v1837_v11 = vadd.f32 %v4064_v35, %v1548_v8  ;;  %v1588_v60 = vadd.f32 %v4014_v26, %v1388_v0 }
 0x22d   :  { %v1577_v27 = vpop.f32.mrf.mxu0  ;;  %v1830_v20 = vpop.f32.mrf.mxu1 }
 0x22e   :  { %v1831_v9 = vadd.f32 %v1830_v20, %v1538_v6  ;;  %v1578_v43 = vadd.f32 %v1577_v27, %v1383_v55 }
 0x231   :  { %v4017_v31 = vpop.f32.mrf.mxu0  ;;  %v4067_v62 = vpop.f32.mrf.mxu1 }
 0x232   :  { %v1849_v2 = vadd.f32 %v4067_v62, %v1568_v29  ;;  %v1608_v34 = vadd.f32 %v4017_v31, %v1398_v36 }
 0x233   :  { %v1597_v63 = vpop.f32.mrf.mxu0  ;;  %v1842_v49 = vpop.f32.mrf.mxu1 }
 0x234   :  { %v1843_v33 = vadd.f32 %v1842_v49, %v1558_v37  ;;  %v1598_v13 = vadd.f32 %v1597_v63, %v1393_v53 }
 0x237   :  { %v4020_v10 = vpop.f32.mrf.mxu0  ;;  %v4070_v30 = vpop.f32.mrf.mxu1 }
 0x238   :  { %v5813_v12 = vadd.f32 %v4070_v30, %v1588_v60  ;;  %v1628_v28 = vadd.f32 %v4020_v10, %v1408_v42 }
 0x239   :  { %v1617_v23 = vpop.f32.mrf.mxu0  ;;  %v1854_v19 = vpop.f32.mrf.mxu1 }
 0x23a   :  { %v5815_v56 = vadd.f32 %v1854_v19, %v1578_v43  ;;  %v1618_v0 = vadd.f32 %v1617_v23, %v1403_v7 }
 0x23d   :  { %v4023_v14 = vpop.f32.mrf.mxu0  ;;  %v4073_v57 = vpop.f32.mrf.mxu1 }
 0x23e   :  { %v5817_v46 = vadd.f32 %v4073_v57, %v1608_v34  ;;  %v1648_v42 = vadd.f32 %v4023_v14, %v5807_v44 }
 0x23f   :  { %v1637_v50 = vpop.f32.mrf.mxu0  ;;  %v1866_v17 = vpop.f32.mrf.mxu1 }
 0x240   :  { %v5819_v54 = vadd.f32 %v1866_v17, %v1598_v13  ;;  %v1638_v7 = vadd.f32 %v1637_v50, %v5809_v16 }
 0x243   :  { %v5821_v21 = vpop.f32.mrf.mxu0  ;;  %v4076_v52 = vpop.f32.mrf.mxu1 }
 0x244   :  { %v5823_v55 = vadd.f32 %v4076_v52, %v1628_v28  ;;  %v1668_v3 = vadd.f32 %v5821_v21, %v5803_v41 }
 0x245   :  { %v5829_v36 = vpop.f32.mrf.mxu0  ;;  %v1878_v53 = vpop.f32.mrf.mxu1 }
 0x246   :  { %v5831_v58 = vadd.f32 %v1878_v53, %v1618_v0 }
 0x249   :  { %v4079_v47 = vpop.f32.mrf.mxu1  ;;  %v4117_v1 = vpop.f32.mrf.mxu0 }
 0x24a   :  { %v5835_v4 = vadd.f32 %v4079_v47, %v1648_v42  ;;  %v2020_v61 = vadd.f32 %v4117_v1, %v1825_v39 }
 0x24b   :  { %v1890_v22 = vpop.f32.mrf.mxu1  ;;  %v2012_v5 = vpop.f32.mrf.mxu0 }
 0x24c   :  { %v5837_v59 = vadd.f32 %v1890_v22, %v1638_v7  ;;  %v2013_v38 = vadd.f32 %v2012_v5, %v1819_v40 }
 0x24f   :  { %v5839_v48 = vpop.f32.mrf.mxu1  ;;  %v4120_v51 = vpop.f32.mrf.mxu0 }
 0x250   :  { %v2034_v18 = vadd.f32 %v4120_v51, %v1837_v11 }
 0x251   :  { %v5841_v25 = vpop.f32.mrf.mxu1  ;;  %v2026_v15 = vpop.f32.mrf.mxu0 }
 0x252   :  { %v2027_v44 = vadd.f32 %v2026_v15, %v1831_v9 }
 0x255   :  { %v4123_v32 = vpop.f32.mrf.mxu0  ;;  %v4173_v24 = vpop.f32.mrf.mxu1 }
 0x256   :  { %v2048_v8 = vadd.f32 %v4123_v32, %v1849_v2  ;;  %v5843_v16 = vadd.f32 %v4173_v24, %v2020_v61 }
 0x257   :  { %v2040_v26 = vpop.f32.mrf.mxu0  ;;  %v2206_v39 = vpop.f32.mrf.mxu1 }
 0x258   :  { %6450 = vst [vmem:[#allocation7_spill] sm:$0xff] %v5843_v16  ;;  %v2041_v35 = vadd.f32 %v2040_v26, %v1843_v33  ;;  %v5845_v6 = vadd.f32 %v2206_v39, %v2013_v38 }
 0x25a   :  { %6451 = vst [vmem:[#allocation19_spill] sm:$0xff] %v5845_v6  ;;  %v1658_v6 = vadd.f32 %v5829_v36, %v5805_v45 }
 0x25b   :  { %v5847_v27 = vpop.f32.mrf.mxu0  ;;  %v4176_v40 = vpop.f32.mrf.mxu1 }
 0x25c   :  { %v5849_v20 = vadd.f32 %v4176_v40, %v2034_v18  ;;  %v1903_v41 = vadd.f32 %v5841_v25, %v1658_v6  ;;  %v2062_v21 = vadd.f32 %v5847_v27, %v5813_v12 }
 0x25d   :  { %v5851_v11 = vpop.f32.mrf.mxu0  ;;  %v2222_v29 = vpop.f32.mrf.mxu1 }
 0x25e   :  { %v5853_v31 = vadd.f32 %v2222_v29, %v2027_v44 }
 0x260   :  { %6452 = vst [vmem:[#allocation15_spill] sm:$0xff] %v5853_v31 }
 0x261   :  { %v4129_v9 = vpop.f32.mrf.mxu0  ;;  %v4179_v62 = vpop.f32.mrf.mxu1 }
 0x262   :  { %v5855_v37 = vadd.f32 %v4179_v62, %v2048_v8 }
 0x263   :  { %v5857_v2 = vpop.f32.mrf.mxu0  ;;  %v2238_v63 = vpop.f32.mrf.mxu1 }
 0x264   :  { %v5859_v49 = vadd.f32 %v2238_v63, %v2041_v35 }
 0x267   :  { %v4132_v33 = vpop.f32.mrf.mxu0  ;;  %v5861_v60 = vpop.f32.mrf.mxu1 }
 0x269   :  { %v2082_v10 = vpop.f32.mrf.mxu0  ;;  %v5863_v30 = vpop.f32.mrf.mxu1 }
 0x26a   :  { %v2083_v16 = vadd.f32 %v2082_v10, %v5831_v58  ;;  %v2069_v58 = vadd.f32 %v5857_v2, %v5819_v54 }
 0x26d   :  { %v4135_v43 = vpop.f32.mrf.mxu0  ;;  %v4185_v23 = vpop.f32.mrf.mxu1 }
 0x26f   :  { %v2096_v19 = vpop.f32.mrf.mxu0  ;;  %v5865_v34 = vpop.f32.mrf.mxu1 }
 0x273   :  { %v4138_v14 = vpop.f32.mrf.mxu0  ;;  %v4188_v57 = vpop.f32.mrf.mxu1 }
 0x275   :  { %v2110_v13 = vpop.f32.mrf.mxu0  ;;  %v2286_v50 = vpop.f32.mrf.mxu1 }
 0x276   :  { %v2287_v45 = vadd.f32 %v2286_v50, %v2083_v16  ;;  %v2111_v10 = vadd.f32 %v2110_v13, %v1903_v41  ;;  %v2271_v16 = vadd.f32 %v5865_v34, %v2069_v58 }
 0x279   :  { %v4191_v17 = vpop.f32.mrf.mxu1  ;;  %v5867_v28 = vpop.f32.mrf.mxu0 }
 0x27a   :  { %6453 = vst [vmem:[#allocation10_spill] sm:$0xff] %v5867_v28 }
 0x27b   :  { %v2302_v52 = vpop.f32.mrf.mxu1  ;;  %v5869_v0 = vpop.f32.mrf.mxu0 }
 0x27c   :  { %6454 = vst [vmem:[#allocation13_spill] sm:$0xff] %v5869_v0  ;;  %v2104_v0 = vadd.f32 %v4135_v43, %v5835_v4 }
 0x27d   :  { %v5871_v53 = vpop.f32.mrf.mxu0 }
 0x27e   :  { %v4194_v42 = vpop.f32.mrf.mxu1 }
 0x27f   :  { %v5873_v47 = vpop.f32.mrf.mxu0 }
 0x280   :  { %6455 = vst [vmem:[#allocation18_spill] sm:$0xff] %v5873_v47  ;;  %v2318_v1 = vpop.f32.mrf.mxu1  ;;  %v2311_v47 = vadd.f32 %v4191_v17, %v2104_v0 }
 0x281   :  { %v5875_v7 = vpop.f32.mrf.mxu0  ;;  %v2319_v27 = vadd.f32 %v2318_v1, %v2111_v10 }
 0x282   :  { %v5877_v61 = vpop.f32.mrf.mxu1 }
 0x283   :  { %6456 = vst [vmem:[#allocation16_spill] sm:$0xff] %v5877_v61  ;;  %v5879_v22 = vpop.f32.mrf.mxu0  ;;  %v2090_v61 = vadd.f32 %v4132_v33, %v5823_v55  ;;  %v2076_v55 = vadd.f32 %v4129_v9, %v5817_v46  ;;  %v2055_v46 = vadd.f32 %v5851_v11, %v5815_v56 }
 0x284   :  { %v5881_v5 = vpop.f32.mrf.mxu1 }
 0x285   :  { %6457 = vst [vmem:[#allocation17_spill] sm:$0xff] %v5881_v5  ;;  %v5883_v38 = vpop.f32.mrf.mxu0  ;;  %v2255_v11 = vadd.f32 %v5863_v30, %v2055_v46 }
 0x286   :  { %v5885_v51 = vpop.f32.mrf.mxu1 }
 0x287   :  { %6458 = vst [vmem:[#allocation8_spill] sm:$0xff] %v5885_v51  ;;  %v5887_v18 = vpop.f32.mrf.mxu0  ;;  %v2097_v51 = vadd.f32 %v2096_v19, %v5837_v59  ;;  %v2279_v59 = vadd.f32 %v4185_v23, %v2076_v55  ;;  %v2263_v23 = vadd.f32 %v5861_v60, %v2062_v21 }
 0x288   :  { %v5889_v15 = vpop.f32.mrf.mxu1 }
 0x289   :  { %6459 = vst [vmem:[#allocation11_spill] sm:$0xff] %v5889_v15  ;;  %v4241_v44 = vpop.f32.mrf.mxu0  ;;  %v1909_v15 = vadd.f32 %v5839_v48, %v1668_v3  ;;  %v2303_v36 = vadd.f32 %v2302_v52, %v2097_v51  ;;  %v2488_v34 = vadd.f32 %v5883_v38, %v2263_v23  ;;  %v2464_v38 = vadd.f32 %v5871_v53, %v5849_v20 }
 0x28a   :  { %v5891_v32 = vpop.f32.mrf.mxu1  ;;  %v2500_v9 = vadd.f32 %v4241_v44, %v2279_v59  ;;  %v2470_v20 = vadd.f32 %v5879_v22, %v5859_v49  ;;  %v6462_v49 = vld [vmem:[#allocation15_spill] sm:$0xff]  ;;  %v6463_v22 = vld [vmem:[#allocation18_spill] sm:$0xff] }
 0x28b   :  { %v2493_v24 = vpop.f32.mrf.mxu0  ;;  %v2118_v4 = vadd.f32 %v4138_v14, %v1909_v15 }
 0x28c   :  { %v5893_v8 = vpop.f32.mrf.mxu1  ;;  %v2494_v13 = vadd.f32 %v2493_v24, %v2271_v16  ;;  %v2482_v24 = vadd.f32 %v5887_v18, %v2255_v11  ;;  %v2732_v11 = vld [vmem:[%s6333_s5] sm:$0x1]  ;;  %s4550_s5 = smov [#allocation3]  }
 0x28d   :  { %6460 = vst [vmem:[#allocation12_spill] sm:$0xff] %v5893_v8  ;;  %v4244_v26 = vpop.f32.mrf.mxu0  ;;  %v2295_v8 = vadd.f32 %v4188_v57, %v2090_v61  ;;  %v2327_v43 = vadd.f32 %v4194_v42, %v2118_v4  ;;  %s3393_s26 = sshll.u32 %s4550_s5, 4  ;;  %s3394_s26 = int_to_ptr.vmem [resolvable:$true] %s3393_s26 }
 0x28e   :  { %v5895_v39 = vpop.f32.mrf.mxu1  ;;  %s4525_s27 = scalar_lea.vmem %s3394_s26, 16  ;;  %s4529_s1 = scalar_lea.vmem %s3394_s26, 32 }
 0x28f   :  { %v2505_v35 = vpop.f32.mrf.mxu0  ;;  %v2512_v3 = vadd.f32 %v4244_v26, %v2295_v8  ;;  %v5926_v26 = vadd.f32 %v5895_v39, %v2488_v34  ;;  %v6469_v34 = vld [vmem:[#allocation19_spill] sm:$0xff]  ;;  %p4526_p0 = scmp.ne.s32.totalorder %s3394_s26, %s4525_s27  ;;  %p4530_p1 = scmp.lt.s32.totalorder %s3394_s26, %s3394_s26 }
 0x290   :  { %v5897_v40 = vpop.f32.mrf.mxu1  ;;  %v2506_v57 = vadd.f32 %v2505_v35, %v2287_v45  ;;  %v6468_v23 = vld [vmem:[#allocation11_spill] sm:$0xff]  ;;  %p4531_p2 = scmp.lt.s32.totalorder %s4529_s1, %s4525_s27 }
 0x291   :  { %v4247_v29 = vpop.f32.mrf.mxu0  ;;  %v5940_v18 = vadd.f32 %v5897_v40, %v2482_v24  ;;  %v2723_v53 = vmax.f32 %v5926_v26, 0.0  ;;  %v6461_v40 = vmov 0.0  }
 0x292   :  { %v4297_v62 = vpop.f32.mrf.mxu1  ;;  %v2524_v48 = vadd.f32 %v4247_v29, %v2311_v47  ;;  %p4532_p3 = por %p4531_p2, %p4530_p1 }
 0x293   :  { %v2517_v63 = vpop.f32.mrf.mxu0  ;;  %v2677_v0 = vadd.f32 %v4297_v62, %v2500_v9  ;;  %v2722_v59 = vmax.f32 %v5940_v18, 0.0  ;;  %v5993_v46 = vand.u32 4294901760, %v2723_v53 }
 0x294   :  { %v2670_v5 = vpop.f32.mrf.mxu1  ;;  %v2518_v25 = vadd.f32 %v2517_v63, %v2303_v36  ;;  %v2476_v63 = vadd.f32 %v5875_v7, %v5855_v37  ;;  %p4533_p4 = pnand %p4532_p3, %p4526_p0 }
 0x295   :  { %v4250_v31 = vpop.f32.mrf.mxu0  ;;  %v2671_v1 = vadd.f32 %v2670_v5, %v2494_v13  ;;  %v2725_v35 = vmax.f32 %v2677_v0, 0.0  ;;  %v6038_v26 = vsub.f32 %v2723_v53, %v5993_v46 }
 0x296   :  { %v4300_v28 = vpop.f32.mrf.mxu1  ;;  %v2536_v50 = vadd.f32 %v4250_v31, %v2327_v43  ;;  %v5956_v37 = vadd.f32 %v5891_v32, %v2476_v63  ;;  %v2458_v32 = vadd.f32 %v6463_v22, %v6462_v49  ;;  %v6472_v63 = vld [vmem:[#allocation17_spill] sm:$0xff] }
 0x297   :  { %v2689_v6 = vadd.f32 %v4300_v28, %v2512_v3  ;;  %v2529_v17 = vpop.f32.mrf.mxu0  ;;  %v2724_v39 = vmax.f32 %v2671_v1, 0.0  ;;  %v5959_v7 = vand.u32 4294901760, %v2725_v35  ;;  %v6470_v1 = vld [vmem:[#allocation13_spill] sm:$0xff] }
 0x298   :  { %v2682_v33 = vpop.f32.mrf.mxu1  ;;  %v2530_v42 = vadd.f32 %v2529_v17, %v2319_v27  ;;  %v6010_v13 = vadd.f32 %v6468_v23, %v2458_v32 }
 0x299   :  { %v2683_v52 = vadd.f32 %v2682_v33, %v2506_v57  ;;  %v2727_v47 = vmax.f32 %v2689_v6, 0.0  ;;  %v5977_v10 = vand.u32 4294901760, %v2724_v39  ;;  %v6465_v6 = vld [vmem:[#allocation8_spill] sm:$0xff]  ;;  %v5996_v16 = vsub.f32 %v2725_v35, %v5959_v7 }
 0x29a   :  { %v4303_v19 = vpop.f32.mrf.mxu1  ;;  %v5990_v17 = vadd.f32 %v6465_v6, %v2464_v38 }
 0x29b   :  { %v2701_v12 = vadd.f32 %v4303_v19, %v2524_v48  ;;  %v2726_v15 = vmax.f32 %v2683_v52, 0.0  ;;  %v5928_v29 = vand.u32 4294901760, %v2727_v47  ;;  %v6464_v48 = vld [vmem:[#allocation12_spill] sm:$0xff]  ;;  %v6466_v52 = vld [vmem:[#allocation7_spill] sm:$0xff]  ;;  %v2879_v35 = vand.u32 4294901760, %v5996_v16 }
 0x29c   :  { %v2694_v14 = vpop.f32.mrf.mxu1  ;;  %v5974_v58 = vadd.f32 %v6464_v48, %v2470_v20 }
 0x29d   :  { %v2729_v54 = vmax.f32 %v2701_v12, 0.0  ;;  %v2695_v2 = vadd.f32 %v2694_v14, %v2518_v25  ;;  %v5942_v41 = vand.u32 4294901760, %v2726_v15  ;;  %v5963_v33 = vsub.f32 %v2727_v47, %v5928_v29 }
 0x29e   :  { %v4306_v28 = vpop.f32.mrf.mxu1  ;;  %v2721_v12 = vmax.f32 %v5956_v37, 0.0  ;;  %v2720_v0 = vmax.f32 %v5974_v58, 0.0  ;;  %v6053_v37 = vand.u32 4294901760, %v2732_v11  ;;  %v2880_v6 = vsub.f32 %v5996_v16, %v2879_v35 }
 0x29f   :  { %v5918_v61 = vand.u32 4294901760, %v2729_v54  ;;  %v2728_v51 = vmax.f32 %v2695_v2, 0.0  ;;  %v2713_v56 = vadd.f32 %v4306_v28, %v2536_v50  ;;  %v5981_v43 = vsub.f32 %v2726_v15, %v5942_v41  ;;  %v6471_v15 = vld [vmem:[#allocation16_spill] sm:$0xff] }
 0x2a0   :  { %v2706_v31 = vpop.f32.mrf.mxu1  ;;  %v2865_v27 = vand.u32 4294901760, %v5963_v33  ;;  %v6017_v28 = vsub.f32 %v2724_v39, %v5977_v10  ;;  %v6033_v24 = vand.u32 4294901760, %v2721_v12  ;;  %v2718_v39 = vmax.f32 %v6010_v13, 0.0 }
 0x2a1   :  { %v5922_v44 = vand.u32 4294901760, %v2728_v51  ;;  %v2731_v8 = vmax.f32 %v2713_v56, 0.0  ;;  %v2707_v60 = vadd.f32 %v2706_v31, %v2530_v42  ;;  %v5931_v62 = vsub.f32 %v2729_v54, %v5918_v61  ;;  %v6467_v54 = vld [vmem:[#allocation10_spill] sm:$0xff] }
 0x2a2   :  { %v2452_v2 = vadd.f32 %v6467_v54, %v6466_v52  ;;  %v6013_v42 = vand.u32 4294901760, %v2722_v59  ;;  %v2872_v47 = vand.u32 4294901760, %v5981_v43  ;;  %v2446_v31 = vadd.f32 %v6470_v1, %v6469_v34 }
 0x2a3   :  { %v5933_v30 = vand.u32 4294901760, %v2731_v8  ;;  %v2730_v5 = vmax.f32 %v2707_v60, 0.0  ;;  %v5945_v21 = vsub.f32 %v2728_v51, %v5922_v44  ;;  %v2851_v45 = vand.u32 4294901760, %v5931_v62 }
 0x2a4   :  { %v2719_v60 = vmax.f32 %v5990_v17, 0.0  ;;  %v6046_v18 = vadd.f32 %v6472_v63, %v2446_v31  ;;  %v6049_v20 = vand.u32 4294901760, %v2720_v0  ;;  %v6056_v53 = vsub.f32 %v2722_v59, %v6013_v42 }
 0x2a5   :  { %v5948_v55 = vsub.f32 %v2731_v8, %v5933_v30  ;;  %v5950_v4 = vand.u32 4294901760, %v2730_v5  ;;  %4308 = vmatpush3.msra.mxu0 %v5933_v30  ;;  %v2858_v19 = vand.u32 4294901760, %v5945_v21  ;;  %v2852_v9 = vsub.f32 %v5931_v62, %v2851_v45 }
 0x2a6   :  { %4309 = vmatprep.subr.mxu0 %v6461_v40  ;;  %v6030_v8 = vadd.f32 %v6471_v15, %v2452_v2  ;;  %v2886_v49 = vand.u32 4294901760, %v6017_v28  ;;  %v2873_v22 = vsub.f32 %v5981_v43, %v2872_v47  ;;  %v6064_v58 = vand.u32 4294901760, %v2719_v60 }
 0x2a7   :  { %v2837_v36 = vand.u32 4294901760, %v5948_v55  ;;  %v5968_v3 = vsub.f32 %v2730_v5, %v5950_v4  ;;  %4310 = vmatpush3.msra.mxu0 %v5950_v4  ;;  %v2859_v51 = vsub.f32 %v5945_v21, %v2858_v19  ;;  %v2866_v5 = vsub.f32 %v5963_v33, %v2865_v27 }
 0x2a8   :  { %4311 = vmatprep.subr.mxu0 %v6461_v40  ;;  %v2853_v38 = vand.u32 4294901760, %v2852_v9  ;;  %v2717_v48 = vmax.f32 %v6030_v8, 0.0  ;;  %v6069_v59 = vsub.f32 %v2721_v12, %v6033_v24  ;;  %v2716_v9 = vmax.f32 %v6046_v18, 0.0 }
 0x2a9   :  { %v2838_v57 = vsub.f32 %v5948_v55, %v2837_v36  ;;  %v2844_v25 = vand.u32 4294901760, %v5968_v3  ;;  %4312 = vmatpush3.msra.mxu0 %v5918_v61  ;;  %v2860_v32 = vand.u32 4294901760, %v2859_v51  ;;  %v2867_v17 = vand.u32 4294901760, %v2866_v5 }
 0x2aa   :  { %4313 = vmatprep.subr.mxu0 %v6461_v40  ;;  %v6082_v12 = vsub.f32 %v2732_v11, %v6053_v37  ;;  %v2900_v52 = vand.u32 4294901760, %v6056_v53  ;;  %v2887_v54 = vsub.f32 %v6017_v28, %v2886_v49  ;;  %v2874_v2 = vand.u32 4294901760, %v2873_v22 }
 0x2ab   :  { %v2845_v14 = vsub.f32 %v5968_v3, %v2844_v25  ;;  %4314 = vmatpush3.msra.mxu0 %v5922_v44  ;;  %v2839_v50 = vand.u32 4294901760, %v2838_v57  ;;  %v2893_v57 = vand.u32 4294901760, %v6038_v26  ;;  %v6092_v23 = vand.u32 4294901760, %v2717_v48 }
 0x2ac   :  { %4315 = vmatprep.subr.mxu0 %v6461_v40  ;;  %v6097_v13 = vsub.f32 %v2719_v60, %v6064_v58  ;;  %v6104_v11 = vand.u32 4294901760, %v2716_v9  ;;  %v2826_v34 = vand.u32 4294901760, %v6082_v12  ;;  %v2901_v15 = vsub.f32 %v6056_v53, %v2900_v52 }
 0x2ad   :  { %4316 = vmatpush3.msra.mxu0 %v5928_v29  ;;  %4343 = vmatpush3.msra.mxu1 %v2839_v50  ;;  %v2846_v56 = vand.u32 4294901760, %v2845_v14  ;;  %v6077_v14 = vand.u32 4294901760, %v2718_v39  ;;  %v6085_v50 = vsub.f32 %v2720_v0, %v6049_v20  ;;  %v2907_v0 = vand.u32 4294901760, %v6069_v59 }
 0x2ae   :  { %4317 = vmatprep.subr.mxu0 %v6461_v40  ;;  %4344 = vmatprep.subr.mxu1 %v6461_v40  ;;  %v2894_v51 = vsub.f32 %v6038_v26, %v2893_v57  ;;  %v2888_v8 = vand.u32 4294901760, %v2887_v54  ;;  %v6120_v60 = vsub.f32 %v2717_v48, %v6092_v23  ;;  %v2921_v5 = vand.u32 4294901760, %v6097_v13 }
 0x2af   :  { %4318 = vmatpush3.msra.mxu0 %v5942_v41  ;;  %4345 = vmatpush3.msra.mxu1 %v2846_v56  ;;  %v2881_v56 = vand.u32 4294901760, %v2880_v6  ;;  %v6110_v1 = vsub.f32 %v2718_v39, %v6077_v14  ;;  %v2914_v31 = vand.u32 4294901760, %v6085_v50  ;;  %v2827_v18 = vsub.f32 %v6082_v12, %v2826_v34 }
 0x2b0   :  { %4319 = vmatprep.subr.mxu0 %v6461_v40  ;;  %4346 = vmatprep.subr.mxu1 %v6461_v40  ;;  %v2895_v63 = vand.u32 4294901760, %v2894_v51  ;;  %v6133_v39 = vsub.f32 %v2716_v9, %v6104_v11  ;;  %v2902_v48 = vand.u32 4294901760, %v2901_v15  ;;  %v2935_v6 = vand.u32 4294901760, %v6120_v60 }
 0x2b1   :  { %4320 = vmatpush3.msra.mxu0 %v5959_v7  ;;  %4347 = vmatpush3.msra.mxu1 %v2853_v38  ;;  %v2908_v38 = vsub.f32 %v6069_v59, %v2907_v0  ;;  %v2928_v22 = vand.u32 4294901760, %v6110_v1  ;;  %v2828_v54 = vand.u32 4294901760, %v2827_v18 }
 0x2b2   :  { %4321 = vmatprep.subr.mxu0 %v6461_v40  ;;  %4348 = vmatprep.subr.mxu1 %v6461_v40  ;;  %v2936_v15 = vsub.f32 %v6120_v60, %v2935_v6 }
 0x2b3   :  { %4322 = vmatpush3.msra.mxu0 %v5977_v10  ;;  %4349 = vmatpush3.msra.mxu1 %v2860_v32  ;;  %v2915_v32 = vsub.f32 %v6085_v50, %v2914_v31  ;;  %v2909_v9 = vand.u32 4294901760, %v2908_v38  ;;  %v2929_v51 = vsub.f32 %v6110_v1, %v2928_v22 }
 0x2b4   :  { %4323 = vmatprep.subr.mxu0 %v6461_v40  ;;  %4350 = vmatprep.subr.mxu1 %v6461_v40  ;;  %v2937_v18 = vand.u32 4294901760, %v2936_v15 }
 0x2b5   :  { %4324 = vmatpush3.msra.mxu0 %v5993_v46  ;;  %4351 = vmatpush3.msra.mxu1 %v2867_v17  ;;  %v2922_v17 = vsub.f32 %v6097_v13, %v2921_v5 }
 0x2b6   :  { %4325 = vmatprep.subr.mxu0 %v6461_v40  ;;  %4352 = vmatprep.subr.mxu1 %v6461_v40 }
 0x2b7   :  { %4326 = vmatpush3.msra.mxu0 %v6013_v42  ;;  %4353 = vmatpush3.msra.mxu1 %v2874_v2  ;;  %v2942_v2 = vand.u32 4294901760, %v6133_v39 }
 0x2b8   :  { %4327 = vmatprep.subr.mxu0 %v6461_v40  ;;  %4354 = vmatprep.subr.mxu1 %v6461_v40 }
 0x2b9   :  { %4328 = vmatpush3.msra.mxu0 %v6033_v24  ;;  %4355 = vmatpush3.msra.mxu1 %v2881_v56  ;;  %v2916_v56 = vand.u32 4294901760, %v2915_v32  ;;  %v2943_v38 = vsub.f32 %v6133_v39, %v2942_v2 }
 0x2ba   :  { %4329 = vmatprep.subr.mxu0 %v6461_v40  ;;  %4356 = vmatprep.subr.mxu1 %v6461_v40 }
 0x2bb   :  { %4330 = vmatpush3.msra.mxu0 %v6049_v20  ;;  %4357 = vmatpush3.msra.mxu1 %v2888_v8  ;;  %v2923_v8 = vand.u32 4294901760, %v2922_v17  ;;  %v2944_v32 = vand.u32 4294901760, %v2943_v38 }
 0x2bc   :  { %4331 = vmatprep.subr.mxu0 %v6461_v40  ;;  %4358 = vmatprep.subr.mxu1 %v6461_v40 }
 0x2bd   :  { %4332 = vmatpush3.msra.mxu0 %v6064_v58  ;;  %4359 = vmatpush3.msra.mxu1 %v2895_v63  ;;  %v2930_v63 = vand.u32 4294901760, %v2929_v51 }
 0x2be   :  { %4333 = vmatprep.subr.mxu0 %v6461_v40  ;;  %4360 = vmatprep.subr.mxu1 %v6461_v40 }
 0x2bf   :  { %4334 = vmatpush3.msra.mxu0 %v6077_v14  ;;  %4361 = vmatpush3.msra.mxu1 %v2902_v48 }
 0x2c0   :  { %4335 = vmatprep.subr.mxu0 %v6461_v40  ;;  %4362 = vmatprep.subr.mxu1 %v6461_v40 }
 0x2c1   :  { %4336 = vmatpush3.msra.mxu0 %v6092_v23  ;;  %4363 = vmatpush3.msra.mxu1 %v2909_v9 }
 0x2c2   :  { %4337 = vmatprep.subr.mxu0 %v6461_v40  ;;  %4364 = vmatprep.subr.mxu1 %v6461_v40 }
 0x2c3   :  { %4338 = vmatpush3.msra.mxu0 %v6104_v11  ;;  %4365 = vmatpush3.msra.mxu1 %v2916_v56 }
 0x2c4   :  { %4340 = vmatmul.mubr.f32.vlgmr.msra.gmra.mxu0 %v2828_v54  ;;  %4366 = vmatprep.subr.mxu1 %v6461_v40 }
 0x2c5   :  { %4377 = vmatprep.subr.mxu0 %v6461_v40  ;;  %4367 = vmatpush3.msra.mxu1 %v2923_v8 }
 0x2c6   :  { %4378 = vmatpush3.msra.mxu0 %v5948_v55  ;;  %4368 = vmatprep.subr.mxu1 %v6461_v40 }
 0x2c7   :  { %4379 = vmatprep.subr.mxu0 %v6461_v40  ;;  %4369 = vmatpush3.msra.mxu1 %v2930_v63 }
 0x2c8   :  { %4380 = vmatpush3.msra.mxu0 %v5968_v3  ;;  %4370 = vmatprep.subr.mxu1 %v6461_v40 }
 0x2c9   :  { %4381 = vmatprep.subr.mxu0 %v6461_v40  ;;  %4371 = vmatpush3.msra.mxu1 %v2937_v18 }
 0x2ca   :  { %4382 = vmatpush3.msra.mxu0 %v5931_v62  ;;  %4372 = vmatprep.subr.mxu1 %v6461_v40 }
 0x2cb   :  { %4383 = vmatprep.subr.mxu0 %v6461_v40  ;;  %4373 = vmatpush3.msra.mxu1 %v2944_v32 }
 0x2cc   :  { %4384 = vmatpush3.msra.mxu0 %v5945_v21  ;;  %4375 = vmatmul.mubr.f32.vlgmr.msra.gmra.mxu1 %v6053_v37 }
 0x2cd   :  { %4385 = vmatprep.subr.mxu0 %v6461_v40  ;;  %4412 = vmatprep.subr.mxu1 %v6461_v40 }
 0x2ce   :  { %4386 = vmatpush3.msra.mxu0 %v5963_v33  ;;  %4413 = vmatpush3.msra.mxu1 %v5933_v30 }
 0x2cf   :  { %4387 = vmatprep.subr.mxu0 %v6461_v40  ;;  %4414 = vmatprep.subr.mxu1 %v6461_v40 }
 0x2d0   :  { %4388 = vmatpush3.msra.mxu0 %v5981_v43  ;;  %4415 = vmatpush3.msra.mxu1 %v5950_v4 }
 0x2d1   :  { %4389 = vmatprep.subr.mxu0 %v6461_v40  ;;  %4416 = vmatprep.subr.mxu1 %v6461_v40 }
 0x2d2   :  { %4390 = vmatpush3.msra.mxu0 %v5996_v16  ;;  %4417 = vmatpush3.msra.mxu1 %v5918_v61 }
 0x2d3   :  { %4391 = vmatprep.subr.mxu0 %v6461_v40  ;;  %4418 = vmatprep.subr.mxu1 %v6461_v40 }
 0x2d4   :  { %4392 = vmatpush3.msra.mxu0 %v6017_v28  ;;  %4419 = vmatpush3.msra.mxu1 %v5922_v44 }
 0x2d5   :  { %4393 = vmatprep.subr.mxu0 %v6461_v40  ;;  %4420 = vmatprep.subr.mxu1 %v6461_v40 }
 0x2d6   :  { %4394 = vmatpush3.msra.mxu0 %v6038_v26  ;;  %4421 = vmatpush3.msra.mxu1 %v5928_v29 }
 0x2d7   :  { %4395 = vmatprep.subr.mxu0 %v6461_v40  ;;  %4422 = vmatprep.subr.mxu1 %v6461_v40 }
 0x2d8   :  { %4396 = vmatpush3.msra.mxu0 %v6056_v53  ;;  %4423 = vmatpush3.msra.mxu1 %v5942_v41 }
 0x2d9   :  { %4397 = vmatprep.subr.mxu0 %v6461_v40  ;;  %4424 = vmatprep.subr.mxu1 %v6461_v40 }
 0x2da   :  { %4398 = vmatpush3.msra.mxu0 %v6069_v59  ;;  %4425 = vmatpush3.msra.mxu1 %v5959_v7 }
 0x2db   :  { %4399 = vmatprep.subr.mxu0 %v6461_v40  ;;  %4426 = vmatprep.subr.mxu1 %v6461_v40 }
 0x2dc   :  { %4400 = vmatpush3.msra.mxu0 %v6085_v50  ;;  %4427 = vmatpush3.msra.mxu1 %v5977_v10 }
 0x2dd   :  { %4401 = vmatprep.subr.mxu0 %v6461_v40  ;;  %4428 = vmatprep.subr.mxu1 %v6461_v40 }
 0x2de   :  { %4402 = vmatpush3.msra.mxu0 %v6097_v13  ;;  %4429 = vmatpush3.msra.mxu1 %v5993_v46 }
 0x2df   :  { %4403 = vmatprep.subr.mxu0 %v6461_v40  ;;  %4430 = vmatprep.subr.mxu1 %v6461_v40 }
 0x2e0   :  { %4404 = vmatpush3.msra.mxu0 %v6110_v1  ;;  %4431 = vmatpush3.msra.mxu1 %v6013_v42 }
 0x2e1   :  { %4405 = vmatprep.subr.mxu0 %v6461_v40  ;;  %4432 = vmatprep.subr.mxu1 %v6461_v40 }
 0x2e2   :  { %4406 = vmatpush3.msra.mxu0 %v6120_v60  ;;  %4433 = vmatpush3.msra.mxu1 %v6033_v24 }
 0x2e3   :  { %4407 = vmatprep.subr.mxu0 %v6461_v40  ;;  %4434 = vmatprep.subr.mxu1 %v6461_v40 }
 0x2e4   :  { %4408 = vmatpush3.msra.mxu0 %v6133_v39  ;;  %4409 = vmatprep.mubr.msk.f32.mxu0 %vm4549_vm1, %v6461_v40 }
 0x2e5   :  { %4435 = vmatpush3.msra.mxu1 %v6049_v20  ;;  %4410 = vmatmul.mubr.f32.vlgmr.msra.gmra.mxu0 %v6082_v12 }
 0x2e6   :  { %4436 = vmatprep.subr.mxu1 %v6461_v40  ;;  %4447 = vmatprep.subr.mxu0 %v6461_v40 }
 0x2e7   :  { %4437 = vmatpush3.msra.mxu1 %v6064_v58  ;;  %4448 = vmatpush3.msra.mxu0 %v2837_v36 }
 0x2e8   :  { %4438 = vmatprep.subr.mxu1 %v6461_v40  ;;  %4449 = vmatprep.subr.mxu0 %v6461_v40 }
 0x2e9   :  { %4439 = vmatpush3.msra.mxu1 %v6077_v14  ;;  %4450 = vmatpush3.msra.mxu0 %v2844_v25 }
 0x2ea   :  { %4440 = vmatprep.subr.mxu1 %v6461_v40  ;;  %4451 = vmatprep.subr.mxu0 %v6461_v40 }
 0x2eb   :  { %4441 = vmatpush3.msra.mxu1 %v6092_v23  ;;  %4452 = vmatpush3.msra.mxu0 %v2851_v45  ;;  %v2737_v45 = vpop.permute.xlu0 %2736 }
 0x2ec   :  { %4442 = vmatprep.subr.mxu1 %v6461_v40  ;;  %4453 = vmatprep.subr.mxu0 %v6461_v40 }
 0x2ed   :  { %4443 = vmatpush3.msra.mxu1 %v6104_v11  ;;  %4444 = vmatprep.mubr.msk.f32.mxu1 %vm4549_vm1, %v6461_v40 }
 0x2ee   :  { %4454 = vmatpush3.msra.mxu0 %v2858_v19  ;;  %4445 = vmatmul.mubr.f32.vlgmr.msra.gmra.mxu1 %v2826_v34 }
 0x2ef   :  { %4455 = vmatprep.subr.mxu0 %v6461_v40  ;;  %4482 = vmatprep.subr.mxu1 %v6461_v40 }
 0x2f0   :  { %4456 = vmatpush3.msra.mxu0 %v2865_v27  ;;  %4483 = vmatpush3.msra.mxu1 %v5933_v30 }
 0x2f1   :  { %4457 = vmatprep.subr.mxu0 %v6461_v40  ;;  %4484 = vmatprep.subr.mxu1 %v6461_v40 }
 0x2f2   :  { %4458 = vmatpush3.msra.mxu0 %v2872_v47  ;;  %4485 = vmatpush3.msra.mxu1 %v5950_v4  ;;  %v2739_v4 = vlaneseq }
 0x2f3   :  { %4459 = vmatprep.subr.mxu0 %v6461_v40  ;;  %4486 = vmatprep.subr.mxu1 %v6461_v40 }
 0x2f4   :  { %4460 = vmatpush3.msra.mxu0 %v2879_v35  ;;  %4487 = vmatpush3.msra.mxu1 %v5918_v61 }
 0x2f5   :  { %4461 = vmatprep.subr.mxu0 %v6461_v40  ;;  %4488 = vmatprep.subr.mxu1 %v6461_v40 }
 0x2f6   :  { %4462 = vmatpush3.msra.mxu0 %v2886_v49  ;;  %4489 = vmatpush3.msra.mxu1 %v5922_v44 }
 0x2f7   :  { %4463 = vmatprep.subr.mxu0 %v6461_v40  ;;  %4490 = vmatprep.subr.mxu1 %v6461_v40 }
 0x2f8   :  { %4464 = vmatpush3.msra.mxu0 %v2893_v57  ;;  %4491 = vmatpush3.msra.mxu1 %v5928_v29 }
 0x2f9   :  { %4465 = vmatprep.subr.mxu0 %v6461_v40  ;;  %4492 = vmatprep.subr.mxu1 %v6461_v40 }
 0x2fa   :  { %4466 = vmatpush3.msra.mxu0 %v2900_v52  ;;  %4493 = vmatpush3.msra.mxu1 %v5942_v41 }
 0x2fb   :  { %4467 = vmatprep.subr.mxu0 %v6461_v40  ;;  %4494 = vmatprep.subr.mxu1 %v6461_v40 }
 0x2fc   :  { %4468 = vmatpush3.msra.mxu0 %v2907_v0  ;;  %4495 = vmatpush3.msra.mxu1 %v5959_v7  ;;  %v2740_v7 = vshrl.u32 %v2739_v4, 7 }
 0x2fd   :  { %4469 = vmatprep.subr.mxu0 %v6461_v40  ;;  %4496 = vmatprep.subr.mxu1 %v6461_v40 }
 0x2fe   :  { %4470 = vmatpush3.msra.mxu0 %v2914_v31  ;;  %4497 = vmatpush3.msra.mxu1 %v5977_v10  ;;  %v2741_v33 = vsub.s32 0, %v2740_v7 }
 0x2ff   :  { %4471 = vmatprep.subr.mxu0 %v6461_v40  ;;  %4498 = vmatprep.subr.mxu1 %v6461_v40 }
 0x300   :  { %4472 = vmatpush3.msra.mxu0 %v2921_v5  ;;  %4499 = vmatpush3.msra.mxu1 %v5993_v46  ;;  %v2742_v36 = vrot.slane %v2737_v45, %v2741_v33 }
 0x301   :  { %4473 = vmatprep.subr.mxu0 %v6461_v40  ;;  %4500 = vmatprep.subr.mxu1 %v6461_v40 }
 0x302   :  { %4474 = vmatpush3.msra.mxu0 %v2928_v22  ;;  %4501 = vmatpush3.msra.mxu1 %v6013_v42 }
 0x303   :  { %4475 = vmatprep.subr.mxu0 %v6461_v40  ;;  %4502 = vmatprep.subr.mxu1 %v6461_v40 }
 0x304   :  { %4476 = vmatpush3.msra.mxu0 %v2935_v6  ;;  %4503 = vmatpush3.msra.mxu1 %v6033_v24 }
 0x305   :  { %4477 = vmatprep.subr.mxu0 %v6461_v40  ;;  %4504 = vmatprep.subr.mxu1 %v6461_v40 }
 0x306   :  { %4478 = vmatpush3.msra.mxu0 %v2942_v2  ;;  %4479 = vmatprep.mubr.msk.f32.mxu0 %vm4549_vm1, %v6461_v40 }
 0x307   :  { %4505 = vmatpush3.msra.mxu1 %v6049_v20  ;;  %4480 = vmatmul.mubr.f32.vlgmr.msra.gmra.mxu0 %v6053_v37 }
 0x308   :  { %4506 = vmatprep.subr.mxu1 %v6461_v40  ;;  %4514 = vmatprep.mubr.msk.f32.mxu1 %vm4549_vm1, %v6461_v40 }
 0x309   :  { %4507 = vmatpush3.msra.mxu1 %v6064_v58 }
 0x30a   :  { %4508 = vmatprep.subr.mxu1 %v6461_v40 }
 0x30b   :  { %4509 = vmatpush3.msra.mxu1 %v6077_v14 }
 0x30c   :  { %4510 = vmatprep.subr.mxu1 %v6461_v40 }
 0x30d   :  { %4511 = vmatpush3.msra.mxu1 %v6092_v23 }
 0x30e   :  { %4512 = vmatprep.subr.mxu1 %v6461_v40 }
 0x30f   :  { %4513 = vmatpush3.msra.mxu1 %v6104_v11 }
 0x310   :  { %4515 = vmatmul.mubr.f32.vlgmr.msra.gmra.mxu1 %v6053_v37 }
 0x384   :  { %v2830_v61 = vpop.f32.mrf.mxu0 }
 0x385   :  { %v2831_v3 = vadd.f32 %v2830_v61, %v2742_v36 }
 0x386   :  { %v4341_v44 = vpop.f32.mrf.mxu0 }
 0x38c   :  { %v2981_v29 = vpop.f32.mrf.mxu1 }
 0x38d   :  { %v2982_v40 = vadd.f32 %v2981_v29, %v2831_v3 }
 0x38e   :  { %v4376_v62 = vpop.f32.mrf.mxu1 }
 0x3a5   :  { %v3085_v30 = vpop.f32.mrf.mxu0 }
 0x3a6   :  { %v3086_v19 = vadd.f32 %v3085_v30, %v2982_v40 }
 0x3a7   :  { %v4411_v41 = vpop.f32.mrf.mxu0 }
 0x3ae   :  { %v3174_v21 = vpop.f32.mrf.mxu1 }
 0x3af   :  { %v3175_v25 = vadd.f32 %v3174_v21, %v3086_v19 }
 0x3b0   :  { %v4446_v55 = vpop.f32.mrf.mxu1 }
 0x3c7   :  { %v3293_v10 = vpop.f32.mrf.mxu0 }
 0x3c8   :  { %v3294_v46 = vadd.f32 %v3293_v10, %v3175_v25 }
 0x3c9   :  { %v4481_v43 = vpop.f32.mrf.mxu0 }
 0x3d0   :  { %v3380_v16 = vpop.f32.mrf.mxu1 }
 0x3d1   :  { %v3381_v27 = vadd.f32 %v3380_v16, %v3294_v46 }
 0x3d2   :  { %v4516_v42 = vpop.f32.mrf.mxu1 }
 0x3d3   :  { %4523 = vtanh.f32 %v3381_v27 }
 0x3e0   :  { %v4524_v28 = vpop.eup %4523 }
 0x3e1   :  { %3386 = vst.msk [vmem:[#allocation3] sm:$0x1] %vm3385_vm2, %v4524_v28 }
 0x3e2   :  { %4536 = shalt.err (!%p4533_p4)
}
 0x3e3   :  { %3396 = dma.vmem_to_hbm [thread:$0]  %s3394_s26, 16, %s6335_s7, [#allocation4]  }
 0x3e4   :  { %4545 = dma.done.wait [#allocation4], 16  }
 0x3e5   :  { %4546 = vsyncadd [#allocation4], 4294967280 }
 0x3e6   :  { %3400 = vsyncpa [#allocation4], 1 }

</bundles_post_ra>
